<compile_context>
chip_gen: v6e
topology: v6e:2x2x1
jax: 0.10.0
libtpu: 0.0.40
codegen_flags: <defaults>
</compile_context>

<pallas_src>
import jax
import jax.numpy as jnp
import numpy as np
from jax.experimental import pallas as pl
from jax.experimental.pallas import tpu as pltpu

EPS = 1e-5


# --------------------------------------------------------------------------- #
# Fused forward kernel                                                         #
# --------------------------------------------------------------------------- #
def _rnn1_fused_kernel(
    x_ref,       # (N, 4*Cin, Lp)       f32   stacked/shifted conv1 operand
    convw_ref,   # (C2, 4*Cin + 3*C1)   f32   [conv1 even/odd combined | conv2 taps]
    convbn_ref,  # (C2, 4)              f32   cols = [s1|sh1|s2|sh2] (s1/sh1 zero-padded)
    wih0_ref,    # (Lp, 4H)             bf16  LSTM layer-0 input projection weight
    lstmw_ref,   # (5H, 4H)             bf16  rows = [whh0; whh1; whh2; wih1; wih2]
    lstmb_ref,   # (3, 4H)              f32   per-layer gate bias (b_ih + b_hh)
    head1_ref,   # (H+3, LT)            f32   rows = [lin1_w.T; lin1_b; bn3 scale; bn3 shift]
    head2_ref,   # (LT+1, NCLS)         f32   rows = [lin2_w.T; lin2_b]
    logits_ref, hn_ref, cn_ref,         # outputs
    y1s_ref, xg0_ref, xh_ref,           # VMEM scratch
):
    N = x_ref.shape[0]                  # PyTorch batch (= LSTM sequence length)
    Cin = x_ref.shape[1] // 4
    Lp = x_ref.shape[2]                 # pooled length (700)
    C2 = convbn_ref.shape[0]            # conv2 out channels (= LSTM batch)
    C1 = C2 // 2                        # conv1 out channels
    H = lstmw_ref.shape[0] // 5         # LSTM hidden size
    Bt = C2
    LT = head1_ref.shape[1]
    f32 = jnp.float32
    bf16 = jnp.bfloat16

    # Zero the two halo columns read by the stacked conv2 operand.  They are never
    # written inside the batch loop (block-0 store covers cols [2:Lp+2], block-2
    # store covers cols [0:Lp]), so zeroing once up front is safe.
    y1s_ref[0:C1, 1:2] = jnp.zeros((C1, 1), f32)
    y1s_ref[2 * C1:3 * C1, Lp:Lp + 1] = jnp.zeros((C1, 1), f32)

    # ---- hoisted invariant loads (all tiny) ----
    w1 = convw_ref[:, 0:4 * Cin]                       # (2*C1, 4*Cin)
    w2 = convw_ref[:, 4 * Cin:4 * Cin + 3 * C1]        # (C2, 3*C1)
    s1 = convbn_ref[0:C1, 0:1]
    sh1 = convbn_ref[0:C1, 1:2]
    s2 = convbn_ref[:, 2:3]
    sh2 = convbn_ref[:, 3:4]
    b0 = lstmb_ref[0:1, :]

    # ---- conv1(+BN1+ReLU+Pool) + conv2(+BN2+ReLU) + fused layer-0 projection ----
    # (C, L) layout: channels on sublanes, length on lanes.  All heavy work is MXU.
    for n in range(N):
        # conv1 even/odd outputs in one dot; BN affine applied before the pool max
        # so semantics hold for any BN scale sign.
        y = jnp.dot(w1, x_ref[n], preferred_element_type=f32)      # (2*C1, Lp)
        ye = y[0:C1, :] * s1 + sh1
        yo = y[C1:2 * C1, :] * s1 + sh1
        y1 = jnp.maximum(jnp.maximum(ye, yo), 0.0)                 # pooled + ReLU

        # build the (3*C1, Lp) stacked-shifted conv2 operand via three row-block
        # copies (tap offsets -1 / 0 / +1), then one MXU dot.
        y1s_ref[0:C1, 2:Lp + 2] = y1
        y1s_ref[C1:2 * C1, 1:Lp + 1] = y1
        y1s_ref[2 * C1:3 * C1, 0:Lp] = y1
        acc2 = jnp.dot(w2, y1s_ref[:, 1:Lp + 1],
                       preferred_element_type=f32)                 # (C2, Lp)
        y2 = jnp.maximum(acc2 * s2 + sh2, 0.0)                     # BN2 + ReLU

        # fused LSTM layer-0 input projection for timestep t=n (bf16 MXU, f32 acc);
        # its MXU pushes overlap the next batch's conv work.
        xg0_ref[n * Bt:(n + 1) * Bt, :] = b0 + jnp.dot(
            y2.astype(bf16), wih0_ref[...], preferred_element_type=f32)

    # ---- 3-layer LSTM (seq len = N, batch = C2, zero initial state) ----
    whh = [lstmw_ref[0:H, :], lstmw_ref[H:2 * H, :], lstmw_ref[2 * H:3 * H, :]]
    wih12 = [lstmw_ref[3 * H:4 * H, :], lstmw_ref[4 * H:5 * H, :]]

    def recurrence(xg_t, whh_l, layer):
        # gates pre-permuted to [i, f, o, g]: one wide sigmoid + one tanh.
        h = jnp.zeros((Bt, H), f32)
        c = jnp.zeros((Bt, H), f32)
        outs = []
        for t in range(N):
            g = xg_t[t] + jnp.dot(h.astype(bf16), whh_l,
                                  preferred_element_type=f32)
            sg = jax.nn.sigmoid(g[:, 0:3 * H])          # [i | f | o]
            gg = jnp.tanh(g[:, 3 * H:4 * H])            # g
            c = sg[:, H:2 * H] * c + sg[:, 0:H] * gg
            h = sg[:, 2 * H:3 * H] * jnp.tanh(c)
            outs.append(h)
        hn_ref[layer] = h
        cn_ref[layer] = c
        return outs

    # layer 0: projection already staged in xg0_ref during the conv loop.
    outs = recurrence([xg0_ref[t * Bt:(t + 1) * Bt, :] for t in range(N)], whh[0], 0)

    # layers 1 & 2: hoisted input projection batched over both timesteps.
    for layer in (1, 2):
        for t in range(N):
            xh_ref[t * Bt:(t + 1) * Bt, :] = outs[t]
        xg_all = lstmb_ref[layer:layer + 1, :] + jnp.dot(
            xh_ref[...].astype(bf16), wih12[layer - 1],
            preferred_element_type=f32)                             # (N*Bt, 4H)
        outs = recurrence([xg_all[t * Bt:(t + 1) * Bt, :] for t in range(N)],
                          whh[layer], layer)

    # ---- head: x[:, -1] -> Linear1 -> BN3 -> ReLU -> Linear2 ----
    for t in range(N):
        xh_ref[t:t + 1, :] = outs[t][Bt - 1:Bt, :]
    xl = xh_ref[0:N, :]                                             # (N, H)
    hw1 = head1_ref[0:H, :]
    hb1 = head1_ref[H:H + 1, :]
    hs3 = head1_ref[H + 1:H + 2, :]
    hsh3 = head1_ref[H + 2:H + 3, :]
    z = jnp.dot(xl, hw1, preferred_element_type=f32) + hb1
    z = jnp.maximum(z * hs3 + hsh3, 0.0)
    hw2 = head2_ref[0:LT, :]
    hb2 = head2_ref[LT:LT + 1, :]
    logits_ref[...] = jnp.dot(z, hw2, preferred_element_type=f32) + hb2


# --------------------------------------------------------------------------- #
# Wrapper: parameter/layout prep + single pallas_call                          #
# --------------------------------------------------------------------------- #
def rnn1_forward(inp, params):
    (conv1_w, conv1_b, bn1, conv2_w, conv2_b, bn2,
     lstm_params, lin1_w, lin1_b, bn3, lin2_w, lin2_b) = params

    N, Cin, L = inp.shape
    C1 = conv1_w.shape[0]
    C2 = conv2_w.shape[0]
    H = lstm_params[0][1].shape[1]
    LT = lin1_w.shape[0]
    NCLS = lin2_w.shape[0]
    Lp = L // 2
    f32 = jnp.float32
    bf16 = jnp.bfloat16

    # -- conv1 input: even/odd de-interleave + halos, stacked so conv1 is one dot --
    #   rows [0:Cin)      : x[2j-1]   (zero at j=0)
    #   rows [Cin:2Cin)   : x[2j]
    #   rows [2Cin:3Cin)  : x[2j+1]
    #   rows [3Cin:4Cin)  : x[2j+2]   (zero at j=Lp-1)
    x_pairs = inp.reshape(N, Cin, Lp, 2)
    e = x_pairs[..., 0]
    o = x_pairs[..., 1]
    zc = jnp.zeros((N, Cin, 1), f32)
    o_m1 = jnp.concatenate([zc, o[:, :, :Lp - 1]], axis=2)
    e_p1 = jnp.concatenate([e[:, :, 1:], zc], axis=2)
    x_stack = jnp.concatenate([o_m1, e, o, e_p1], axis=1)           # (N, 4*Cin, Lp)

    # -- conv weights: conv1 even/odd combined (2*C1, 4*Cin) + conv2 taps (C2, 3*C1)
    z_c1 = jnp.zeros((C1, Cin), f32)
    w_even = jnp.concatenate(
        [conv1_w[:, :, 0], conv1_w[:, :, 1], conv1_w[:, :, 2], z_c1], axis=1)
    w_odd = jnp.concatenate(
        [z_c1, conv1_w[:, :, 0], conv1_w[:, :, 1], conv1_w[:, :, 2]], axis=1)
    w1 = jnp.concatenate([w_even, w_odd], axis=0)                   # (2*C1, 4*Cin)
    w2 = jnp.concatenate(
        [conv2_w[:, :, 0], conv2_w[:, :, 1], conv2_w[:, :, 2]], axis=1)  # (C2, 3*C1)
    convw = jnp.concatenate([w1, w2], axis=1)                       # (C2, 4Cin+3C1)

    def fold_bn(gamma, beta, mean, var, prev_bias):
        scale = gamma / jnp.sqrt(var + EPS)
        shift = (prev_bias - mean) * scale + beta
        return scale, shift

    s1, sh1 = fold_bn(*bn1, conv1_b)
    s2, sh2 = fold_bn(*bn2, conv2_b)
    pad1 = jnp.zeros((C2 - C1,), f32)
    convbn = jnp.stack([jnp.concatenate([s1, pad1]),
                        jnp.concatenate([sh1, pad1]), s2, sh2], axis=1)   # (C2, 4)

    # -- LSTM: gate reorder [i,f,g,o] -> [i,f,o,g], transpose, bf16 MXU operands --
    def reorder(w):
        i, f, g, o = jnp.split(w, 4, axis=0)
        return jnp.concatenate([i, f, o, g], axis=0)

    wih, whh, bias = [], [], []
    for (W_ih, W_hh, b_ih, b_hh) in lstm_params:
        wih.append(reorder(W_ih).T.astype(bf16))
        whh.append(reorder(W_hh).T.astype(bf16))
        bias.append(reorder((b_ih + b_hh)[:, None]).T)              # (1, 4H) f32

    wih0 = wih[0]                                                   # (Lp, 4H) bf16
    lstmw = jnp.concatenate([whh[0], whh[1], whh[2], wih[1], wih[2]], axis=0)
    lstmb = jnp.concatenate(bias, axis=0)                           # (3, 4H) f32

    # -- head (BN3 folded into scale/shift) --
    bn3_g, bn3_b, bn3_m, bn3_v = bn3
    hs3 = bn3_g / jnp.sqrt(bn3_v + EPS)
    hsh3 = bn3_b - bn3_m * hs3
    head1 = jnp.concatenate(
        [lin1_w.T, lin1_b[None, :], hs3[None, :], hsh3[None, :]], axis=0)  # (H+3, LT)
    head2 = jnp.concatenate([lin2_w.T, lin2_b[None, :]], axis=0)    # (LT+1, NCLS)

    out_shapes = (
        jax.ShapeDtypeStruct((N, NCLS), f32),                       # logits
        jax.ShapeDtypeStruct((3, C2, H), f32),                      # h_n
        jax.ShapeDtypeStruct((3, C2, H), f32),                      # c_n
    )
    # TODO(synk): for serving many independent sequences on v7x, add a leading
    # batch grid axis with dimension_semantics=("parallel",) so both TCs are used.
    return pl.pallas_call(
        _rnn1_fused_kernel,
        out_shape=out_shapes,
        scratch_shapes=[
            pltpu.VMEM((3 * C1, Lp + 2), f32),     # stacked-shifted conv2 operand
            pltpu.VMEM((N * C2, 4 * H), f32),      # layer-0 hoisted input projection
            pltpu.VMEM((N * C2, H), f32),          # staged hidden-layer inputs
        ],
    )(x_stack, convw, convbn, wih0, lstmw, lstmb, head1, head2)


# --------------------------------------------------------------------------- #
# Plain-JAX reference (mirrors the PyTorch module in eval mode)                #
# --------------------------------------------------------------------------- #
def _reference_forward(inp, params):
    (conv1_w, conv1_b, bn1, conv2_w, conv2_b, bn2,
     lstm_params, lin1_w, lin1_b, bn3, lin2_w, lin2_b) = params
    HI = jax.lax.Precision.HIGHEST

    def conv1d(x, w, b):
        L = x.shape[-1]
        xp = jnp.pad(x, ((0, 0), (0, 0), (1, 1)))
        out = jnp.zeros((x.shape[0], w.shape[0], L), jnp.float32) + b[None, :, None]
        for k in range(3):
            out = out + jnp.einsum('oi,nil->nol', w[:, :, k], xp[:, :, k:k + L],
                                   precision=HI)
        return out

    def bn_eval(x, stats):
        g, b, m, v = stats
        return ((x - m[None, :, None]) / jnp.sqrt(v[None, :, None] + EPS)
                * g[None, :, None] + b[None, :, None])

    x = jnp.maximum(bn_eval(conv1d(inp, conv1_w, conv1_b), bn1), 0.0)
    N, C, L = x.shape
    x = x.reshape(N, C, L // 2, 2).max(axis=3)
    x = jnp.maximum(bn_eval(conv1d(x, conv2_w, conv2_b), bn2), 0.0)

    T, B, _ = x.shape
    H = lstm_params[0][1].shape[1]
    seq = [x[t] for t in range(T)]
    h_n, c_n = [], []
    for (W_ih, W_hh, b_ih, b_hh) in lstm_params:
        h = jnp.zeros((B, H), jnp.float32)
        c = jnp.zeros((B, H), jnp.float32)
        nxt = []
        for t in range(T):
            g = (jnp.dot(seq[t], W_ih.T, precision=HI)
                 + jnp.dot(h, W_hh.T, precision=HI) + b_ih + b_hh)
            i = jax.nn.sigmoid(g[:, 0:H]); f = jax.nn.sigmoid(g[:, H:2 * H])
            gg = jnp.tanh(g[:, 2 * H:3 * H]); o = jax.nn.sigmoid(g[:, 3 * H:4 * H])
            c = f * c + i * gg
            h = o * jnp.tanh(c)
            nxt.append(h)
        seq = nxt; h_n.append(h); c_n.append(c)
    y = jnp.stack(seq)             # (T, B, H)
    xl = y[:, -1]                  # (T, H)   == PyTorch x[:, -1]

    g3, b3, m3, v3 = bn3
    z = jnp.dot(xl, lin1_w.T, precision=HI) + lin1_b
    z = (z - m3) / jnp.sqrt(v3 + EPS) * g3 + b3
    z = jnp.maximum(z, 0.0)
    logits = jnp.dot(z, lin2_w.T, precision=HI) + lin2_b
    return logits, jnp.stack(h_n), jnp.stack(c_n)


# --------------------------------------------------------------------------- #
if __name__ == "__main__":
    # Sizes implied by the module: LSTM input_size is hard-coded to 700, so the
    # post-pool length must be 700  ->  input length L = 1400.
    N, Cin, L = 2, 4, 1400          # batch, input_channel, length
    C1 = 8                          # output_channel
    C2 = 2 * C1
    H = 32                          # hidden_channel
    LT = 24                         # linear_transform
    NCLS = 5                        # classes

    keys = iter(jax.random.split(jax.random.PRNGKey(0), 64))

    def unif(shape, fan_in):
        k = 1.0 / float(fan_in) ** 0.5
        return jax.random.uniform(next(keys), shape, jnp.float32, -k, k)

    # ---- parameters (PyTorch layouts), deterministic synthetic init ----
    conv1_w = unif((C1, Cin, 3), Cin * 3);   conv1_b = unif((C1,), Cin * 3)
    bn1 = (1.0 + 0.1 * jax.random.normal(next(keys), (C1,)),
           0.1 * jax.random.normal(next(keys), (C1,)),
           0.1 * jax.random.normal(next(keys), (C1,)),
           jax.random.uniform(next(keys), (C1,), jnp.float32, 0.5, 1.5))

    conv2_w = unif((C2, C1, 3), C1 * 3);     conv2_b = unif((C2,), C1 * 3)
    bn2 = (1.0 + 0.1 * jax.random.normal(next(keys), (C2,)),
           0.1 * jax.random.normal(next(keys), (C2,)),
           0.1 * jax.random.normal(next(keys), (C2,)),
           jax.random.uniform(next(keys), (C2,), jnp.float32, 0.5, 1.5))

    lstm_params = []
    for layer in range(3):
        in_sz = L // 2 if layer == 0 else H
        lstm_params.append((unif((4 * H, in_sz), H), unif((4 * H, H), H),
                            unif((4 * H,), H), unif((4 * H,), H)))

    lin1_w = unif((LT, H), H);       lin1_b = unif((LT,), H)
    bn3 = (1.0 + 0.1 * jax.random.normal(next(keys), (LT,)),
           0.1 * jax.random.normal(next(keys), (LT,)),
           0.1 * jax.random.normal(next(keys), (LT,)),
           jax.random.uniform(next(keys), (LT,), jnp.float32, 0.5, 1.5))
    lin2_w = unif((NCLS, LT), LT);   lin2_b = unif((NCLS,), LT)

    params = (conv1_w, conv1_b, bn1, conv2_w, conv2_b, bn2,
              lstm_params, lin1_w, lin1_b, bn3, lin2_w, lin2_b)

    # ---- input (PyTorch NCL) ----
    inp = jax.random.normal(next(keys), (N, Cin, L), jnp.float32)

    # ---- fused Pallas forward ----
    logits, h_n, c_n = jax.jit(rnn1_forward)(inp, params)
    jax.block_until_ready((logits, h_n, c_n))

    # ---- check against a plain-JAX (f32 HIGHEST) reference of the PyTorch module.
    # Tolerance reflects the bf16 MXU operands used for the LSTM matmuls (f32 acc).
    ref_logits, ref_hn, ref_cn = jax.jit(_reference_forward)(inp, params)
    np.testing.assert_allclose(np.asarray(logits), np.asarray(ref_logits),
                               rtol=2e-2, atol=2e-2)
    np.testing.assert_allclose(np.asarray(h_n), np.asarray(ref_hn),
                               rtol=2e-2, atol=2e-2)
    np.testing.assert_allclose(np.asarray(c_n), np.asarray(ref_cn),
                               rtol=2e-2, atol=2e-2)

    assert logits.shape == (N, NCLS)
    assert h_n.shape == (3, C2, H) and c_n.shape == (3, C2, H)
    print("KERNEL_OK")
</pallas_src>

<mosaic_0001>
module attributes {stable_mosaic.version = 11 : i64} {
  func.func @_rnn1_fused_kernel(%arg0: memref<2x16x700xf32, #tpu.memory_space<vmem>>, %arg1: memref<16x40xf32, #tpu.memory_space<vmem>>, %arg2: memref<16x4xf32, #tpu.memory_space<vmem>>, %arg3: memref<700x128xbf16, #tpu.memory_space<vmem>>, %arg4: memref<160x128xbf16, #tpu.memory_space<vmem>>, %arg5: memref<3x128xf32, #tpu.memory_space<vmem>>, %arg6: memref<35x24xf32, #tpu.memory_space<vmem>>, %arg7: memref<25x5xf32, #tpu.memory_space<vmem>>, %arg8: memref<2x5xf32, #tpu.memory_space<vmem>>, %arg9: memref<3x16x32xf32, #tpu.memory_space<vmem>>, %arg10: memref<3x16x32xf32, #tpu.memory_space<vmem>>, %arg11: memref<24x702xf32, #tpu.memory_space<vmem>>, %arg12: memref<32x128xf32, #tpu.memory_space<vmem>>, %arg13: memref<32x32xf32, #tpu.memory_space<vmem>>) attributes {dimension_semantics = [], scalar_prefetch = 0 : i64, scratch_operands = 3 : i64, tpu.core_type = #tpu.core_type<tc>} {
    %cst = arith.constant 0.000000e+00 : f32
    %0 = vector.broadcast %cst : f32 to vector<8x1xf32>
    %c0 = arith.constant 0 : index
    %c1 = arith.constant 1 : index
    %1 = vector.load %arg11[%c0, %c1] : memref<24x702xf32, #tpu.memory_space<vmem>>, vector<8x1xf32>
    tpu.vector_store %arg11[%c0, %c1], %0 {strides = array<i32>} : memref<24x702xf32, #tpu.memory_space<vmem>>, vector<8x1xf32>,
    %cst_0 = arith.constant 0.000000e+00 : f32
    %2 = vector.broadcast %cst_0 : f32 to vector<8x1xf32>
    %c16 = arith.constant 16 : index
    %c700 = arith.constant 700 : index
    %3 = vector.load %arg11[%c16, %c700] : memref<24x702xf32, #tpu.memory_space<vmem>>, vector<8x1xf32>
    tpu.vector_store %arg11[%c16, %c700], %2 {strides = array<i32>} : memref<24x702xf32, #tpu.memory_space<vmem>>, vector<8x1xf32>,
    %c0_1 = arith.constant 0 : index
    %c0_2 = arith.constant 0 : index
    %4 = vector.load %arg1[%c0_1, %c0_2] : memref<16x40xf32, #tpu.memory_space<vmem>>, vector<16x16xf32>
    %c0_3 = arith.constant 0 : index
    %c16_4 = arith.constant 16 : index
    %5 = vector.load %arg1[%c0_3, %c16_4] : memref<16x40xf32, #tpu.memory_space<vmem>>, vector<16x24xf32>
    %c0_5 = arith.constant 0 : index
    %c0_6 = arith.constant 0 : index
    %6 = vector.load %arg2[%c0_5, %c0_6] : memref<16x4xf32, #tpu.memory_space<vmem>>, vector<8x1xf32>
    %c0_7 = arith.constant 0 : index
    %c1_8 = arith.constant 1 : index
    %7 = vector.load %arg2[%c0_7, %c1_8] : memref<16x4xf32, #tpu.memory_space<vmem>>, vector<8x1xf32>
    %c0_9 = arith.constant 0 : index
    %c2 = arith.constant 2 : index
    %8 = vector.load %arg2[%c0_9, %c2] : memref<16x4xf32, #tpu.memory_space<vmem>>, vector<16x1xf32>
    %c0_10 = arith.constant 0 : index
    %c3 = arith.constant 3 : index
    %9 = vector.load %arg2[%c0_10, %c3] : memref<16x4xf32, #tpu.memory_space<vmem>>, vector<16x1xf32>
    %c0_11 = arith.constant 0 : index
    %c0_12 = arith.constant 0 : index
    %10 = vector.load %arg5[%c0_11, %c0_12] : memref<3x128xf32, #tpu.memory_space<vmem>>, vector<1x128xf32>
    %c0_13 = arith.constant 0 : index
    %c0_14 = arith.constant 0 : index
    %c0_15 = arith.constant 0 : index
    %11 = vector.load %arg0[%c0_13, %c0_14, %c0_15] : memref<2x16x700xf32, #tpu.memory_space<vmem>>, vector<1x16x700xf32>
    %12 = vector.shape_cast %11 : vector<1x16x700xf32> to vector<16x700xf32>
    %cst_16 = arith.constant dense<0.000000e+00> : vector<16x700xf32>
    %13 = tpu.matmul %4, %12, %cst_16 {dimension_numbers = #tpu.dot_dimension_numbers<[1], [0], [0], [1], [0, 0, 1, 1], [], []>} : vector<16x16xf32>, vector<16x700xf32>, vector<16x700xf32> -> vector<16x700xf32>
    %14 = vector.extract_strided_slice %13 {offsets = [0, 0], sizes = [8, 700], strides = [1, 1]} : vector<16x700xf32> to vector<8x700xf32>
    %15 = vector.broadcast %6 : vector<8x1xf32> to vector<8x700xf32>
    %16 = arith.mulf %14, %15 : vector<8x700xf32>
    %17 = vector.broadcast %7 : vector<8x1xf32> to vector<8x700xf32>
    %18 = arith.addf %16, %17 : vector<8x700xf32>
    %19 = vector.extract_strided_slice %13 {offsets = [8, 0], sizes = [8, 700], strides = [1, 1]} : vector<16x700xf32> to vector<8x700xf32>
    %20 = vector.broadcast %6 : vector<8x1xf32> to vector<8x700xf32>
    %21 = arith.mulf %19, %20 : vector<8x700xf32>
    %22 = vector.broadcast %7 : vector<8x1xf32> to vector<8x700xf32>
    %23 = arith.addf %21, %22 : vector<8x700xf32>
    %24 = arith.maximumf %18, %23 : vector<8x700xf32>
    %cst_17 = arith.constant 0.000000e+00 : f32
    %25 = vector.broadcast %cst_17 : f32 to vector<8x700xf32>
    %26 = arith.maximumf %24, %25 : vector<8x700xf32>
    %c0_18 = arith.constant 0 : index
    %c2_19 = arith.constant 2 : index
    %27 = vector.load %arg11[%c0_18, %c2_19] : memref<24x702xf32, #tpu.memory_space<vmem>>, vector<8x700xf32>
    tpu.vector_store %arg11[%c0_18, %c2_19], %26 {strides = array<i32>} : memref<24x702xf32, #tpu.memory_space<vmem>>, vector<8x700xf32>,
    %c8 = arith.constant 8 : index
    %c1_20 = arith.constant 1 : index
    %28 = vector.load %arg11[%c8, %c1_20] : memref<24x702xf32, #tpu.memory_space<vmem>>, vector<8x700xf32>
    tpu.vector_store %arg11[%c8, %c1_20], %26 {strides = array<i32>} : memref<24x702xf32, #tpu.memory_space<vmem>>, vector<8x700xf32>,
    %c16_21 = arith.constant 16 : index
    %c0_22 = arith.constant 0 : index
    %29 = vector.load %arg11[%c16_21, %c0_22] : memref<24x702xf32, #tpu.memory_space<vmem>>, vector<8x700xf32>
    tpu.vector_store %arg11[%c16_21, %c0_22], %26 {strides = array<i32>} : memref<24x702xf32, #tpu.memory_space<vmem>>, vector<8x700xf32>,
    %c0_23 = arith.constant 0 : index
    %c1_24 = arith.constant 1 : index
    %30 = vector.load %arg11[%c0_23, %c1_24] : memref<24x702xf32, #tpu.memory_space<vmem>>, vector<24x700xf32>
    %cst_25 = arith.constant dense<0.000000e+00> : vector<16x700xf32>
    %31 = tpu.matmul %5, %30, %cst_25 {dimension_numbers = #tpu.dot_dimension_numbers<[1], [0], [0], [1], [0, 0, 1, 1], [], []>} : vector<16x24xf32>, vector<24x700xf32>, vector<16x700xf32> -> vector<16x700xf32>
    %32 = vector.broadcast %8 : vector<16x1xf32> to vector<16x700xf32>
    %33 = arith.mulf %31, %32 : vector<16x700xf32>
    %34 = vector.broadcast %9 : vector<16x1xf32> to vector<16x700xf32>
    %35 = arith.addf %33, %34 : vector<16x700xf32>
    %cst_26 = arith.constant 0.000000e+00 : f32
    %36 = vector.broadcast %cst_26 : f32 to vector<16x700xf32>
    %37 = arith.maximumf %35, %36 : vector<16x700xf32>
    %38 = arith.truncf %37 : vector<16x700xf32> to vector<16x700xbf16>
    %c0_27 = arith.constant 0 : index
    %c0_28 = arith.constant 0 : index
    %39 = vector.load %arg3[%c0_27, %c0_28] : memref<700x128xbf16, #tpu.memory_space<vmem>>, vector<700x128xbf16>
    %cst_29 = arith.constant dense<0.000000e+00> : vector<16x128xf32>
    %40 = tpu.matmul %38, %39, %cst_29 {dimension_numbers = #tpu.dot_dimension_numbers<[1], [0], [0], [1], [0, 0, 1, 1], [], []>} : vector<16x700xbf16>, vector<700x128xbf16>, vector<16x128xf32> -> vector<16x128xf32>
    %41 = vector.broadcast %10 : vector<1x128xf32> to vector<16x128xf32>
    %42 = arith.addf %41, %40 : vector<16x128xf32>
    %c0_30 = arith.constant 0 : index
    %c0_31 = arith.constant 0 : index
    %43 = vector.load %arg12[%c0_30, %c0_31] : memref<32x128xf32, #tpu.memory_space<vmem>>, vector<16x128xf32>
    tpu.vector_store %arg12[%c0_30, %c0_31], %42 {strides = array<i32>} : memref<32x128xf32, #tpu.memory_space<vmem>>, vector<16x128xf32>,
    %c1_32 = arith.constant 1 : index
    %c0_33 = arith.constant 0 : index
    %c0_34 = arith.constant 0 : index
    %44 = vector.load %arg0[%c1_32, %c0_33, %c0_34] : memref<2x16x700xf32, #tpu.memory_space<vmem>>, vector<1x16x700xf32>
    %45 = vector.shape_cast %44 : vector<1x16x700xf32> to vector<16x700xf32>
    %cst_35 = arith.constant dense<0.000000e+00> : vector<16x700xf32>
    %46 = tpu.matmul %4, %45, %cst_35 {dimension_numbers = #tpu.dot_dimension_numbers<[1], [0], [0], [1], [0, 0, 1, 1], [], []>} : vector<16x16xf32>, vector<16x700xf32>, vector<16x700xf32> -> vector<16x700xf32>
    %47 = vector.extract_strided_slice %46 {offsets = [0, 0], sizes = [8, 700], strides = [1, 1]} : vector<16x700xf32> to vector<8x700xf32>
    %48 = vector.broadcast %6 : vector<8x1xf32> to vector<8x700xf32>
    %49 = arith.mulf %47, %48 : vector<8x700xf32>
    %50 = vector.broadcast %7 : vector<8x1xf32> to vector<8x700xf32>
    %51 = arith.addf %49, %50 : vector<8x700xf32>
    %52 = vector.extract_strided_slice %46 {offsets = [8, 0], sizes = [8, 700], strides = [1, 1]} : vector<16x700xf32> to vector<8x700xf32>
    %53 = vector.broadcast %6 : vector<8x1xf32> to vector<8x700xf32>
    %54 = arith.mulf %52, %53 : vector<8x700xf32>
    %55 = vector.broadcast %7 : vector<8x1xf32> to vector<8x700xf32>
    %56 = arith.addf %54, %55 : vector<8x700xf32>
    %57 = arith.maximumf %51, %56 : vector<8x700xf32>
    %cst_36 = arith.constant 0.000000e+00 : f32
    %58 = vector.broadcast %cst_36 : f32 to vector<8x700xf32>
    %59 = arith.maximumf %57, %58 : vector<8x700xf32>
    %c0_37 = arith.constant 0 : index
    %c2_38 = arith.constant 2 : index
    %60 = vector.load %arg11[%c0_37, %c2_38] : memref<24x702xf32, #tpu.memory_space<vmem>>, vector<8x700xf32>
    tpu.vector_store %arg11[%c0_37, %c2_38], %59 {strides = array<i32>} : memref<24x702xf32, #tpu.memory_space<vmem>>, vector<8x700xf32>,
    %c8_39 = arith.constant 8 : index
    %c1_40 = arith.constant 1 : index
    %61 = vector.load %arg11[%c8_39, %c1_40] : memref<24x702xf32, #tpu.memory_space<vmem>>, vector<8x700xf32>
    tpu.vector_store %arg11[%c8_39, %c1_40], %59 {strides = array<i32>} : memref<24x702xf32, #tpu.memory_space<vmem>>, vector<8x700xf32>,
    %c16_41 = arith.constant 16 : index
    %c0_42 = arith.constant 0 : index
    %62 = vector.load %arg11[%c16_41, %c0_42] : memref<24x702xf32, #tpu.memory_space<vmem>>, vector<8x700xf32>
    tpu.vector_store %arg11[%c16_41, %c0_42], %59 {strides = array<i32>} : memref<24x702xf32, #tpu.memory_space<vmem>>, vector<8x700xf32>,
    %c0_43 = arith.constant 0 : index
    %c1_44 = arith.constant 1 : index
    %63 = vector.load %arg11[%c0_43, %c1_44] : memref<24x702xf32, #tpu.memory_space<vmem>>, vector<24x700xf32>
    %cst_45 = arith.constant dense<0.000000e+00> : vector<16x700xf32>
    %64 = tpu.matmul %5, %63, %cst_45 {dimension_numbers = #tpu.dot_dimension_numbers<[1], [0], [0], [1], [0, 0, 1, 1], [], []>} : vector<16x24xf32>, vector<24x700xf32>, vector<16x700xf32> -> vector<16x700xf32>
    %65 = vector.broadcast %8 : vector<16x1xf32> to vector<16x700xf32>
    %66 = arith.mulf %64, %65 : vector<16x700xf32>
    %67 = vector.broadcast %9 : vector<16x1xf32> to vector<16x700xf32>
    %68 = arith.addf %66, %67 : vector<16x700xf32>
    %cst_46 = arith.constant 0.000000e+00 : f32
    %69 = vector.broadcast %cst_46 : f32 to vector<16x700xf32>
    %70 = arith.maximumf %68, %69 : vector<16x700xf32>
    %71 = arith.truncf %70 : vector<16x700xf32> to vector<16x700xbf16>
    %c0_47 = arith.constant 0 : index
    %c0_48 = arith.constant 0 : index
    %72 = vector.load %arg3[%c0_47, %c0_48] : memref<700x128xbf16, #tpu.memory_space<vmem>>, vector<700x128xbf16>
    %cst_49 = arith.constant dense<0.000000e+00> : vector<16x128xf32>
    %73 = tpu.matmul %71, %72, %cst_49 {dimension_numbers = #tpu.dot_dimension_numbers<[1], [0], [0], [1], [0, 0, 1, 1], [], []>} : vector<16x700xbf16>, vector<700x128xbf16>, vector<16x128xf32> -> vector<16x128xf32>
    %74 = vector.broadcast %10 : vector<1x128xf32> to vector<16x128xf32>
    %75 = arith.addf %74, %73 : vector<16x128xf32>
    %c16_50 = arith.constant 16 : index
    %c0_51 = arith.constant 0 : index
    %76 = vector.load %arg12[%c16_50, %c0_51] : memref<32x128xf32, #tpu.memory_space<vmem>>, vector<16x128xf32>
    tpu.vector_store %arg12[%c16_50, %c0_51], %75 {strides = array<i32>} : memref<32x128xf32, #tpu.memory_space<vmem>>, vector<16x128xf32>,
    %c0_52 = arith.constant 0 : index
    %c0_53 = arith.constant 0 : index
    %77 = vector.load %arg4[%c0_52, %c0_53] : memref<160x128xbf16, #tpu.memory_space<vmem>>, vector<32x128xbf16>
    %c32 = arith.constant 32 : index
    %c0_54 = arith.constant 0 : index
    %78 = vector.load %arg4[%c32, %c0_54] : memref<160x128xbf16, #tpu.memory_space<vmem>>, vector<32x128xbf16>
    %c64 = arith.constant 64 : index
    %c0_55 = arith.constant 0 : index
    %79 = vector.load %arg4[%c64, %c0_55] : memref<160x128xbf16, #tpu.memory_space<vmem>>, vector<32x128xbf16>
    %c96 = arith.constant 96 : index
    %c0_56 = arith.constant 0 : index
    %80 = vector.load %arg4[%c96, %c0_56] : memref<160x128xbf16, #tpu.memory_space<vmem>>, vector<32x128xbf16>
    %c128 = arith.constant 128 : index
    %c0_57 = arith.constant 0 : index
    %81 = vector.load %arg4[%c128, %c0_57] : memref<160x128xbf16, #tpu.memory_space<vmem>>, vector<32x128xbf16>
    %c0_58 = arith.constant 0 : index
    %c0_59 = arith.constant 0 : index
    %82 = vector.load %arg12[%c0_58, %c0_59] : memref<32x128xf32, #tpu.memory_space<vmem>>, vector<16x128xf32>
    %c16_60 = arith.constant 16 : index
    %c0_61 = arith.constant 0 : index
    %83 = vector.load %arg12[%c16_60, %c0_61] : memref<32x128xf32, #tpu.memory_space<vmem>>, vector<16x128xf32>
    %cst_62 = arith.constant 0.000000e+00 : f32
    %84 = vector.broadcast %cst_62 : f32 to vector<16x32xf32>
    %cst_63 = arith.constant 0.000000e+00 : f32
    %85 = vector.broadcast %cst_63 : f32 to vector<16x32xf32>
    %86 = arith.truncf %84 : vector<16x32xf32> to vector<16x32xbf16>
    %cst_64 = arith.constant dense<0.000000e+00> : vector<16x128xf32>
    %87 = tpu.matmul %86, %77, %cst_64 {dimension_numbers = #tpu.dot_dimension_numbers<[1], [0], [0], [1], [0, 0, 1, 1], [], []>} : vector<16x32xbf16>, vector<32x128xbf16>, vector<16x128xf32> -> vector<16x128xf32>
    %88 = arith.addf %82, %87 : vector<16x128xf32>
    %89 = vector.extract_strided_slice %88 {offsets = [0, 0], sizes = [16, 96], strides = [1, 1]} : vector<16x128xf32> to vector<16x96xf32>
    %90 = arith.negf %89 : vector<16x96xf32>
    %91 = math.exp %90 : vector<16x96xf32>
    %cst_65 = arith.constant 1.000000e+00 : f32
    %92 = vector.broadcast %cst_65 : f32 to vector<16x96xf32>
    %93 = arith.addf %92, %91 : vector<16x96xf32>
    %94 = arith.divf %92, %93 : vector<16x96xf32>
    %95 = vector.extract_strided_slice %88 {offsets = [0, 96], sizes = [16, 32], strides = [1, 1]} : vector<16x128xf32> to vector<16x32xf32>
    %96 = math.tanh %95 : vector<16x32xf32>
    %97 = vector.extract_strided_slice %94 {offsets = [0, 32], sizes = [16, 32], strides = [1, 1]} : vector<16x96xf32> to vector<16x32xf32>
    %98 = arith.mulf %97, %85 : vector<16x32xf32>
    %99 = vector.extract_strided_slice %94 {offsets = [0, 0], sizes = [16, 32], strides = [1, 1]} : vector<16x96xf32> to vector<16x32xf32>
    %100 = arith.mulf %99, %96 : vector<16x32xf32>
    %101 = arith.addf %98, %100 : vector<16x32xf32>
    %102 = vector.extract_strided_slice %94 {offsets = [0, 64], sizes = [16, 32], strides = [1, 1]} : vector<16x96xf32> to vector<16x32xf32>
    %103 = math.tanh %101 : vector<16x32xf32>
    %104 = arith.mulf %102, %103 : vector<16x32xf32>
    %105 = arith.truncf %104 : vector<16x32xf32> to vector<16x32xbf16>
    %cst_66 = arith.constant dense<0.000000e+00> : vector<16x128xf32>
    %106 = tpu.matmul %105, %77, %cst_66 {dimension_numbers = #tpu.dot_dimension_numbers<[1], [0], [0], [1], [0, 0, 1, 1], [], []>} : vector<16x32xbf16>, vector<32x128xbf16>, vector<16x128xf32> -> vector<16x128xf32>
    %107 = arith.addf %83, %106 : vector<16x128xf32>
    %108 = vector.extract_strided_slice %107 {offsets = [0, 0], sizes = [16, 96], strides = [1, 1]} : vector<16x128xf32> to vector<16x96xf32>
    %109 = arith.negf %108 : vector<16x96xf32>
    %110 = math.exp %109 : vector<16x96xf32>
    %cst_67 = arith.constant 1.000000e+00 : f32
    %111 = vector.broadcast %cst_67 : f32 to vector<16x96xf32>
    %112 = arith.addf %111, %110 : vector<16x96xf32>
    %113 = arith.divf %111, %112 : vector<16x96xf32>
    %114 = vector.extract_strided_slice %107 {offsets = [0, 96], sizes = [16, 32], strides = [1, 1]} : vector<16x128xf32> to vector<16x32xf32>
    %115 = math.tanh %114 : vector<16x32xf32>
    %116 = vector.extract_strided_slice %113 {offsets = [0, 32], sizes = [16, 32], strides = [1, 1]} : vector<16x96xf32> to vector<16x32xf32>
    %117 = arith.mulf %116, %101 : vector<16x32xf32>
    %118 = vector.extract_strided_slice %113 {offsets = [0, 0], sizes = [16, 32], strides = [1, 1]} : vector<16x96xf32> to vector<16x32xf32>
    %119 = arith.mulf %118, %115 : vector<16x32xf32>
    %120 = arith.addf %117, %119 : vector<16x32xf32>
    %121 = vector.extract_strided_slice %113 {offsets = [0, 64], sizes = [16, 32], strides = [1, 1]} : vector<16x96xf32> to vector<16x32xf32>
    %122 = math.tanh %120 : vector<16x32xf32>
    %123 = arith.mulf %121, %122 : vector<16x32xf32>
    %c0_68 = arith.constant 0 : index
    %c0_69 = arith.constant 0 : index
    %c0_70 = arith.constant 0 : index
    %124 = vector.load %arg9[%c0_68, %c0_69, %c0_70] : memref<3x16x32xf32, #tpu.memory_space<vmem>>, vector<1x16x32xf32>
    %125 = vector.shape_cast %124 : vector<1x16x32xf32> to vector<16x32xf32>
    %126 = vector.shape_cast %123 : vector<16x32xf32> to vector<1x16x32xf32>
    tpu.vector_store %arg9[%c0_68, %c0_69, %c0_70], %126 {strides = array<i32>} : memref<3x16x32xf32, #tpu.memory_space<vmem>>, vector<1x16x32xf32>,
    %c0_71 = arith.constant 0 : index
    %c0_72 = arith.constant 0 : index
    %c0_73 = arith.constant 0 : index
    %127 = vector.load %arg10[%c0_71, %c0_72, %c0_73] : memref<3x16x32xf32, #tpu.memory_space<vmem>>, vector<1x16x32xf32>
    %128 = vector.shape_cast %127 : vector<1x16x32xf32> to vector<16x32xf32>
    %129 = vector.shape_cast %120 : vector<16x32xf32> to vector<1x16x32xf32>
    tpu.vector_store %arg10[%c0_71, %c0_72, %c0_73], %129 {strides = array<i32>} : memref<3x16x32xf32, #tpu.memory_space<vmem>>, vector<1x16x32xf32>,
    %c0_74 = arith.constant 0 : index
    %c0_75 = arith.constant 0 : index
    %130 = vector.load %arg13[%c0_74, %c0_75] : memref<32x32xf32, #tpu.memory_space<vmem>>, vector<16x32xf32>
    tpu.vector_store %arg13[%c0_74, %c0_75], %104 {strides = array<i32>} : memref<32x32xf32, #tpu.memory_space<vmem>>, vector<16x32xf32>,
    %c16_76 = arith.constant 16 : index
    %c0_77 = arith.constant 0 : index
    %131 = vector.load %arg13[%c16_76, %c0_77] : memref<32x32xf32, #tpu.memory_space<vmem>>, vector<16x32xf32>
    tpu.vector_store %arg13[%c16_76, %c0_77], %123 {strides = array<i32>} : memref<32x32xf32, #tpu.memory_space<vmem>>, vector<16x32xf32>,
    %c1_78 = arith.constant 1 : index
    %c0_79 = arith.constant 0 : index
    %132 = vector.load %arg5[%c1_78, %c0_79] : memref<3x128xf32, #tpu.memory_space<vmem>>, vector<1x128xf32>
    %c0_80 = arith.constant 0 : index
    %c0_81 = arith.constant 0 : index
    %133 = vector.load %arg13[%c0_80, %c0_81] : memref<32x32xf32, #tpu.memory_space<vmem>>, vector<32x32xf32>
    %134 = arith.truncf %133 : vector<32x32xf32> to vector<32x32xbf16>
    %cst_82 = arith.constant dense<0.000000e+00> : vector<32x128xf32>
    %135 = tpu.matmul %134, %80, %cst_82 {dimension_numbers = #tpu.dot_dimension_numbers<[1], [0], [0], [1], [0, 0, 1, 1], [], []>} : vector<32x32xbf16>, vector<32x128xbf16>, vector<32x128xf32> -> vector<32x128xf32>
    %136 = vector.broadcast %132 : vector<1x128xf32> to vector<32x128xf32>
    %137 = arith.addf %136, %135 : vector<32x128xf32>
    %138 = vector.extract_strided_slice %137 {offsets = [0, 0], sizes = [16, 128], strides = [1, 1]} : vector<32x128xf32> to vector<16x128xf32>
    %139 = vector.extract_strided_slice %137 {offsets = [16, 0], sizes = [16, 128], strides = [1, 1]} : vector<32x128xf32> to vector<16x128xf32>
    %cst_83 = arith.constant 0.000000e+00 : f32
    %140 = vector.broadcast %cst_83 : f32 to vector<16x32xf32>
    %cst_84 = arith.constant 0.000000e+00 : f32
    %141 = vector.broadcast %cst_84 : f32 to vector<16x32xf32>
    %142 = arith.truncf %140 : vector<16x32xf32> to vector<16x32xbf16>
    %cst_85 = arith.constant dense<0.000000e+00> : vector<16x128xf32>
    %143 = tpu.matmul %142, %78, %cst_85 {dimension_numbers = #tpu.dot_dimension_numbers<[1], [0], [0], [1], [0, 0, 1, 1], [], []>} : vector<16x32xbf16>, vector<32x128xbf16>, vector<16x128xf32> -> vector<16x128xf32>
    %144 = arith.addf %138, %143 : vector<16x128xf32>
    %145 = vector.extract_strided_slice %144 {offsets = [0, 0], sizes = [16, 96], strides = [1, 1]} : vector<16x128xf32> to vector<16x96xf32>
    %146 = arith.negf %145 : vector<16x96xf32>
    %147 = math.exp %146 : vector<16x96xf32>
    %cst_86 = arith.constant 1.000000e+00 : f32
    %148 = vector.broadcast %cst_86 : f32 to vector<16x96xf32>
    %149 = arith.addf %148, %147 : vector<16x96xf32>
    %150 = arith.divf %148, %149 : vector<16x96xf32>
    %151 = vector.extract_strided_slice %144 {offsets = [0, 96], sizes = [16, 32], strides = [1, 1]} : vector<16x128xf32> to vector<16x32xf32>
    %152 = math.tanh %151 : vector<16x32xf32>
    %153 = vector.extract_strided_slice %150 {offsets = [0, 32], sizes = [16, 32], strides = [1, 1]} : vector<16x96xf32> to vector<16x32xf32>
    %154 = arith.mulf %153, %141 : vector<16x32xf32>
    %155 = vector.extract_strided_slice %150 {offsets = [0, 0], sizes = [16, 32], strides = [1, 1]} : vector<16x96xf32> to vector<16x32xf32>
    %156 = arith.mulf %155, %152 : vector<16x32xf32>
    %157 = arith.addf %154, %156 : vector<16x32xf32>
    %158 = vector.extract_strided_slice %150 {offsets = [0, 64], sizes = [16, 32], strides = [1, 1]} : vector<16x96xf32> to vector<16x32xf32>
    %159 = math.tanh %157 : vector<16x32xf32>
    %160 = arith.mulf %158, %159 : vector<16x32xf32>
    %161 = arith.truncf %160 : vector<16x32xf32> to vector<16x32xbf16>
    %cst_87 = arith.constant dense<0.000000e+00> : vector<16x128xf32>
    %162 = tpu.matmul %161, %78, %cst_87 {dimension_numbers = #tpu.dot_dimension_numbers<[1], [0], [0], [1], [0, 0, 1, 1], [], []>} : vector<16x32xbf16>, vector<32x128xbf16>, vector<16x128xf32> -> vector<16x128xf32>
    %163 = arith.addf %139, %162 : vector<16x128xf32>
    %164 = vector.extract_strided_slice %163 {offsets = [0, 0], sizes = [16, 96], strides = [1, 1]} : vector<16x128xf32> to vector<16x96xf32>
    %165 = arith.negf %164 : vector<16x96xf32>
    %166 = math.exp %165 : vector<16x96xf32>
    %cst_88 = arith.constant 1.000000e+00 : f32
    %167 = vector.broadcast %cst_88 : f32 to vector<16x96xf32>
    %168 = arith.addf %167, %166 : vector<16x96xf32>
    %169 = arith.divf %167, %168 : vector<16x96xf32>
    %170 = vector.extract_strided_slice %163 {offsets = [0, 96], sizes = [16, 32], strides = [1, 1]} : vector<16x128xf32> to vector<16x32xf32>
    %171 = math.tanh %170 : vector<16x32xf32>
    %172 = vector.extract_strided_slice %169 {offsets = [0, 32], sizes = [16, 32], strides = [1, 1]} : vector<16x96xf32> to vector<16x32xf32>
    %173 = arith.mulf %172, %157 : vector<16x32xf32>
    %174 = vector.extract_strided_slice %169 {offsets = [0, 0], sizes = [16, 32], strides = [1, 1]} : vector<16x96xf32> to vector<16x32xf32>
    %175 = arith.mulf %174, %171 : vector<16x32xf32>
    %176 = arith.addf %173, %175 : vector<16x32xf32>
    %177 = vector.extract_strided_slice %169 {offsets = [0, 64], sizes = [16, 32], strides = [1, 1]} : vector<16x96xf32> to vector<16x32xf32>
    %178 = math.tanh %176 : vector<16x32xf32>
    %179 = arith.mulf %177, %178 : vector<16x32xf32>
    %c1_89 = arith.constant 1 : index
    %c0_90 = arith.constant 0 : index
    %c0_91 = arith.constant 0 : index
    %180 = vector.load %arg9[%c1_89, %c0_90, %c0_91] : memref<3x16x32xf32, #tpu.memory_space<vmem>>, vector<1x16x32xf32>
    %181 = vector.shape_cast %180 : vector<1x16x32xf32> to vector<16x32xf32>
    %182 = vector.shape_cast %179 : vector<16x32xf32> to vector<1x16x32xf32>
    tpu.vector_store %arg9[%c1_89, %c0_90, %c0_91], %182 {strides = array<i32>} : memref<3x16x32xf32, #tpu.memory_space<vmem>>, vector<1x16x32xf32>,
    %c1_92 = arith.constant 1 : index
    %c0_93 = arith.constant 0 : index
    %c0_94 = arith.constant 0 : index
    %183 = vector.load %arg10[%c1_92, %c0_93, %c0_94] : memref<3x16x32xf32, #tpu.memory_space<vmem>>, vector<1x16x32xf32>
    %184 = vector.shape_cast %183 : vector<1x16x32xf32> to vector<16x32xf32>
    %185 = vector.shape_cast %176 : vector<16x32xf32> to vector<1x16x32xf32>
    tpu.vector_store %arg10[%c1_92, %c0_93, %c0_94], %185 {strides = array<i32>} : memref<3x16x32xf32, #tpu.memory_space<vmem>>, vector<1x16x32xf32>,
    %c0_95 = arith.constant 0 : index
    %c0_96 = arith.constant 0 : index
    %186 = vector.load %arg13[%c0_95, %c0_96] : memref<32x32xf32, #tpu.memory_space<vmem>>, vector<16x32xf32>
    tpu.vector_store %arg13[%c0_95, %c0_96], %160 {strides = array<i32>} : memref<32x32xf32, #tpu.memory_space<vmem>>, vector<16x32xf32>,
    %c16_97 = arith.constant 16 : index
    %c0_98 = arith.constant 0 : index
    %187 = vector.load %arg13[%c16_97, %c0_98] : memref<32x32xf32, #tpu.memory_space<vmem>>, vector<16x32xf32>
    tpu.vector_store %arg13[%c16_97, %c0_98], %179 {strides = array<i32>} : memref<32x32xf32, #tpu.memory_space<vmem>>, vector<16x32xf32>,
    %c2_99 = arith.constant 2 : index
    %c0_100 = arith.constant 0 : index
    %188 = vector.load %arg5[%c2_99, %c0_100] : memref<3x128xf32, #tpu.memory_space<vmem>>, vector<1x128xf32>
    %c0_101 = arith.constant 0 : index
    %c0_102 = arith.constant 0 : index
    %189 = vector.load %arg13[%c0_101, %c0_102] : memref<32x32xf32, #tpu.memory_space<vmem>>, vector<32x32xf32>
    %190 = arith.truncf %189 : vector<32x32xf32> to vector<32x32xbf16>
    %cst_103 = arith.constant dense<0.000000e+00> : vector<32x128xf32>
    %191 = tpu.matmul %190, %81, %cst_103 {dimension_numbers = #tpu.dot_dimension_numbers<[1], [0], [0], [1], [0, 0, 1, 1], [], []>} : vector<32x32xbf16>, vector<32x128xbf16>, vector<32x128xf32> -> vector<32x128xf32>
    %192 = vector.broadcast %188 : vector<1x128xf32> to vector<32x128xf32>
    %193 = arith.addf %192, %191 : vector<32x128xf32>
    %194 = vector.extract_strided_slice %193 {offsets = [0, 0], sizes = [16, 128], strides = [1, 1]} : vector<32x128xf32> to vector<16x128xf32>
    %195 = vector.extract_strided_slice %193 {offsets = [16, 0], sizes = [16, 128], strides = [1, 1]} : vector<32x128xf32> to vector<16x128xf32>
    %cst_104 = arith.constant 0.000000e+00 : f32
    %196 = vector.broadcast %cst_104 : f32 to vector<16x32xf32>
    %cst_105 = arith.constant 0.000000e+00 : f32
    %197 = vector.broadcast %cst_105 : f32 to vector<16x32xf32>
    %198 = arith.truncf %196 : vector<16x32xf32> to vector<16x32xbf16>
    %cst_106 = arith.constant dense<0.000000e+00> : vector<16x128xf32>
    %199 = tpu.matmul %198, %79, %cst_106 {dimension_numbers = #tpu.dot_dimension_numbers<[1], [0], [0], [1], [0, 0, 1, 1], [], []>} : vector<16x32xbf16>, vector<32x128xbf16>, vector<16x128xf32> -> vector<16x128xf32>
    %200 = arith.addf %194, %199 : vector<16x128xf32>
    %201 = vector.extract_strided_slice %200 {offsets = [0, 0], sizes = [16, 96], strides = [1, 1]} : vector<16x128xf32> to vector<16x96xf32>
    %202 = arith.negf %201 : vector<16x96xf32>
    %203 = math.exp %202 : vector<16x96xf32>
    %cst_107 = arith.constant 1.000000e+00 : f32
    %204 = vector.broadcast %cst_107 : f32 to vector<16x96xf32>
    %205 = arith.addf %204, %203 : vector<16x96xf32>
    %206 = arith.divf %204, %205 : vector<16x96xf32>
    %207 = vector.extract_strided_slice %200 {offsets = [0, 96], sizes = [16, 32], strides = [1, 1]} : vector<16x128xf32> to vector<16x32xf32>
    %208 = math.tanh %207 : vector<16x32xf32>
    %209 = vector.extract_strided_slice %206 {offsets = [0, 32], sizes = [16, 32], strides = [1, 1]} : vector<16x96xf32> to vector<16x32xf32>
    %210 = arith.mulf %209, %197 : vector<16x32xf32>
    %211 = vector.extract_strided_slice %206 {offsets = [0, 0], sizes = [16, 32], strides = [1, 1]} : vector<16x96xf32> to vector<16x32xf32>
    %212 = arith.mulf %211, %208 : vector<16x32xf32>
    %213 = arith.addf %210, %212 : vector<16x32xf32>
    %214 = vector.extract_strided_slice %206 {offsets = [0, 64], sizes = [16, 32], strides = [1, 1]} : vector<16x96xf32> to vector<16x32xf32>
    %215 = math.tanh %213 : vector<16x32xf32>
    %216 = arith.mulf %214, %215 : vector<16x32xf32>
    %217 = arith.truncf %216 : vector<16x32xf32> to vector<16x32xbf16>
    %cst_108 = arith.constant dense<0.000000e+00> : vector<16x128xf32>
    %218 = tpu.matmul %217, %79, %cst_108 {dimension_numbers = #tpu.dot_dimension_numbers<[1], [0], [0], [1], [0, 0, 1, 1], [], []>} : vector<16x32xbf16>, vector<32x128xbf16>, vector<16x128xf32> -> vector<16x128xf32>
    %219 = arith.addf %195, %218 : vector<16x128xf32>
    %220 = vector.extract_strided_slice %219 {offsets = [0, 0], sizes = [16, 96], strides = [1, 1]} : vector<16x128xf32> to vector<16x96xf32>
    %221 = arith.negf %220 : vector<16x96xf32>
    %222 = math.exp %221 : vector<16x96xf32>
    %cst_109 = arith.constant 1.000000e+00 : f32
    %223 = vector.broadcast %cst_109 : f32 to vector<16x96xf32>
    %224 = arith.addf %223, %222 : vector<16x96xf32>
    %225 = arith.divf %223, %224 : vector<16x96xf32>
    %226 = vector.extract_strided_slice %219 {offsets = [0, 96], sizes = [16, 32], strides = [1, 1]} : vector<16x128xf32> to vector<16x32xf32>
    %227 = math.tanh %226 : vector<16x32xf32>
    %228 = vector.extract_strided_slice %225 {offsets = [0, 32], sizes = [16, 32], strides = [1, 1]} : vector<16x96xf32> to vector<16x32xf32>
    %229 = arith.mulf %228, %213 : vector<16x32xf32>
    %230 = vector.extract_strided_slice %225 {offsets = [0, 0], sizes = [16, 32], strides = [1, 1]} : vector<16x96xf32> to vector<16x32xf32>
    %231 = arith.mulf %230, %227 : vector<16x32xf32>
    %232 = arith.addf %229, %231 : vector<16x32xf32>
    %233 = vector.extract_strided_slice %225 {offsets = [0, 64], sizes = [16, 32], strides = [1, 1]} : vector<16x96xf32> to vector<16x32xf32>
    %234 = math.tanh %232 : vector<16x32xf32>
    %235 = arith.mulf %233, %234 : vector<16x32xf32>
    %c2_110 = arith.constant 2 : index
    %c0_111 = arith.constant 0 : index
    %c0_112 = arith.constant 0 : index
    %236 = vector.load %arg9[%c2_110, %c0_111, %c0_112] : memref<3x16x32xf32, #tpu.memory_space<vmem>>, vector<1x16x32xf32>
    %237 = vector.shape_cast %236 : vector<1x16x32xf32> to vector<16x32xf32>
    %238 = vector.shape_cast %235 : vector<16x32xf32> to vector<1x16x32xf32>
    tpu.vector_store %arg9[%c2_110, %c0_111, %c0_112], %238 {strides = array<i32>} : memref<3x16x32xf32, #tpu.memory_space<vmem>>, vector<1x16x32xf32>,
    %c2_113 = arith.constant 2 : index
    %c0_114 = arith.constant 0 : index
    %c0_115 = arith.constant 0 : index
    %239 = vector.load %arg10[%c2_113, %c0_114, %c0_115] : memref<3x16x32xf32, #tpu.memory_space<vmem>>, vector<1x16x32xf32>
    %240 = vector.shape_cast %239 : vector<1x16x32xf32> to vector<16x32xf32>
    %241 = vector.shape_cast %232 : vector<16x32xf32> to vector<1x16x32xf32>
    tpu.vector_store %arg10[%c2_113, %c0_114, %c0_115], %241 {strides = array<i32>} : memref<3x16x32xf32, #tpu.memory_space<vmem>>, vector<1x16x32xf32>,
    %242 = vector.extract_strided_slice %216 {offsets = [15, 0], sizes = [1, 32], strides = [1, 1]} : vector<16x32xf32> to vector<1x32xf32>
    %c0_116 = arith.constant 0 : index
    %c0_117 = arith.constant 0 : index
    %243 = vector.load %arg13[%c0_116, %c0_117] : memref<32x32xf32, #tpu.memory_space<vmem>>, vector<1x32xf32>
    tpu.vector_store %arg13[%c0_116, %c0_117], %242 {strides = array<i32>} : memref<32x32xf32, #tpu.memory_space<vmem>>, vector<1x32xf32>,
    %244 = vector.extract_strided_slice %235 {offsets = [15, 0], sizes = [1, 32], strides = [1, 1]} : vector<16x32xf32> to vector<1x32xf32>
    %c1_118 = arith.constant 1 : index
    %c0_119 = arith.constant 0 : index
    %245 = vector.load %arg13[%c1_118, %c0_119] : memref<32x32xf32, #tpu.memory_space<vmem>>, vector<1x32xf32>
    tpu.vector_store %arg13[%c1_118, %c0_119], %244 {strides = array<i32>} : memref<32x32xf32, #tpu.memory_space<vmem>>, vector<1x32xf32>,
    %c0_120 = arith.constant 0 : index
    %c0_121 = arith.constant 0 : index
    %246 = vector.load %arg13[%c0_120, %c0_121] : memref<32x32xf32, #tpu.memory_space<vmem>>, vector<2x32xf32>
    %c0_122 = arith.constant 0 : index
    %c0_123 = arith.constant 0 : index
    %247 = vector.load %arg6[%c0_122, %c0_123] : memref<35x24xf32, #tpu.memory_space<vmem>>, vector<32x24xf32>
    %c32_124 = arith.constant 32 : index
    %c0_125 = arith.constant 0 : index
    %248 = vector.load %arg6[%c32_124, %c0_125] : memref<35x24xf32, #tpu.memory_space<vmem>>, vector<1x24xf32>
    %c33 = arith.constant 33 : index
    %c0_126 = arith.constant 0 : index
    %249 = vector.load %arg6[%c33, %c0_126] : memref<35x24xf32, #tpu.memory_space<vmem>>, vector<1x24xf32>
    %c34 = arith.constant 34 : index
    %c0_127 = arith.constant 0 : index
    %250 = vector.load %arg6[%c34, %c0_127] : memref<35x24xf32, #tpu.memory_space<vmem>>, vector<1x24xf32>
    %cst_128 = arith.constant dense<0.000000e+00> : vector<2x24xf32>
    %251 = tpu.matmul %246, %247, %cst_128 {dimension_numbers = #tpu.dot_dimension_numbers<[1], [0], [0], [1], [0, 0, 1, 1], [], []>} : vector<2x32xf32>, vector<32x24xf32>, vector<2x24xf32> -> vector<2x24xf32>
    %252 = vector.broadcast %248 : vector<1x24xf32> to vector<2x24xf32>
    %253 = arith.addf %251, %252 : vector<2x24xf32>
    %254 = vector.broadcast %249 : vector<1x24xf32> to vector<2x24xf32>
    %255 = arith.mulf %253, %254 : vector<2x24xf32>
    %256 = vector.broadcast %250 : vector<1x24xf32> to vector<2x24xf32>
    %257 = arith.addf %255, %256 : vector<2x24xf32>
    %cst_129 = arith.constant 0.000000e+00 : f32
    %258 = vector.broadcast %cst_129 : f32 to vector<2x24xf32>
    %259 = arith.maximumf %257, %258 : vector<2x24xf32>
    %c0_130 = arith.constant 0 : index
    %c0_131 = arith.constant 0 : index
    %260 = vector.load %arg7[%c0_130, %c0_131] : memref<25x5xf32, #tpu.memory_space<vmem>>, vector<24x5xf32>
    %c24 = arith.constant 24 : index
    %c0_132 = arith.constant 0 : index
    %261 = vector.load %arg7[%c24, %c0_132] : memref<25x5xf32, #tpu.memory_space<vmem>>, vector<1x5xf32>
    %cst_133 = arith.constant dense<0.000000e+00> : vector<2x5xf32>
    %262 = tpu.matmul %259, %260, %cst_133 {dimension_numbers = #tpu.dot_dimension_numbers<[1], [0], [0], [1], [0, 0, 1, 1], [], []>} : vector<2x24xf32>, vector<24x5xf32>, vector<2x5xf32> -> vector<2x5xf32>
    %263 = vector.broadcast %261 : vector<1x5xf32> to vector<2x5xf32>
    %264 = arith.addf %262, %263 : vector<2x5xf32>
    %c0_134 = arith.constant 0 : index
    %c0_135 = arith.constant 0 : index
    %265 = vector.load %arg8[%c0_134, %c0_135] : memref<2x5xf32, #tpu.memory_space<vmem>>, vector<2x5xf32>
    tpu.vector_store %arg8[%c0_134, %c0_135], %264 {strides = array<i32>} : memref<2x5xf32, #tpu.memory_space<vmem>>, vector<2x5xf32>,
    return
  }
}

</mosaic_0001>

<bundles_post_ra>
// kernel: rnn1_forward.1
= control target key start
LH: loop header
LB: loop body
LE: loop exit
PB: predicated region body
PF: predicated region fallthrough
CT: control target
= control target key end

     0   :  { %16 = vsyncpa [#allocation6], 0  ;;  %vm56_vm0 = vcmask 130048   ;;  %v4291_v9 = vmov 0.0   ;;  %v4292_v16 = vmov 0   ;;  %v4293_v17 = vmov 1   ;;  %s5361_s0 = inlined_call_operand.vmem [shape: f32[2,16,700], index: 0, kind: input, shape index: {}]   ;;  %s5362_s1 = inlined_call_operand.vmem [shape: f32[16,40], index: 1, kind: input, shape index: {}]   ;;  %s5363_s2 = inlined_call_operand.vmem [shape: f32[16,4], index: 2, kind: input, shape index: {}]   ;;  %s5364_s3 = inlined_call_operand.vmem [shape: bf16[700,128], index: 3, kind: input, shape index: {}]   ;;  %s5365_s4 = inlined_call_operand.vmem [shape: bf16[160,128], index: 4, kind: input, shape index: {}]   ;;  %s5366_s5 = inlined_call_operand.vmem [shape: f32[3,128], index: 5, kind: input, shape index: {}]   ;;  %s5367_s6 = inlined_call_operand.vmem [shape: f32[35,24], index: 6, kind: input, shape index: {}]   ;;  %s5368_s7 = inlined_call_operand.vmem [shape: f32[25,5], index: 7, kind: input, shape index: {}]   ;;  %s5369_s8 = inlined_call_operand.hbm [shape: f32[2,5], index: 8, kind: output, shape index: {0}]   ;;  %s5370_s9 = inlined_call_operand.hbm [shape: f32[3,16,32], index: 9, kind: output, shape index: {1}]   ;;  %s5371_s10 = inlined_call_operand.hbm [shape: f32[3,16,32], index: 10, kind: output, shape index: {2}]  }
   0x1   :  { %v51_v0 = vld [vmem:[%s5361_s0 + $0x38] sm:$0xff]  ;;  %v53_v1 = vld [vmem:[%s5361_s0 + $0x48] sm:$0xff]  ;;  %v50_v2 = vld [vmem:[%s5361_s0 + $0x30] sm:$0xff]  ;;  %127 = vmatprep.mubr.f32.mxu0 %v4291_v9  ;;  %204 = vmatprep.mubr.f32.mxu1 %v4291_v9 }
   0x2   :  { %91 = vmatprep.subr.mxu0 %v51_v0  ;;  %168 = vmatprep.subr.mxu1 %v53_v1  ;;  %v52_v3 = vld [vmem:[%s5361_s0 + $0x40] sm:$0xff]  ;;  %v45_v4 = vld [vmem:[%s5361_s0 + $0x8] sm:$0xff]  ;;  %v47_v5 = vld [vmem:[%s5361_s0 + $0x18] sm:$0xff] }
   0x3   :  { %92 = vmatpush1.msra.mxu0 %v50_v2  ;;  %169 = vmatpush1.msra.mxu1 %v52_v3  ;;  %v44_v6 = vld [vmem:[%s5361_s0] sm:$0xff]  ;;  %v46_v7 = vld [vmem:[%s5361_s0 + $0x10] sm:$0xff]  ;;  %v55_v10 = vld [vmem:[%s5361_s0 + $0x58] sm:$0xff] }
   0x4   :  { %93 = vmatprep.subr.mxu0 %v45_v4  ;;  %170 = vmatprep.subr.mxu1 %v47_v5  ;;  %v4391_v8 = vld [vmem:[%s5362_s1] sm:$0xff]  ;;  %v54_v11 = vld [vmem:[%s5361_s0 + $0x50] sm:$0xff]  ;;  %v4409_v13 = vld [vmem:[%s5362_s1 + $0x8] sm:$0xff] }
   0x5   :  { %94 = vmatpush1.msra.mxu0 %v44_v6  ;;  %v4403_v12 = vld [vmem:[%s5363_s2] sm:$0xff]  ;;  %171 = vmatpush1.msra.mxu1 %v46_v7  ;;  %v49_v14 = vld [vmem:[%s5361_s0 + $0x28] sm:$0xff] }
   0x6   :  { %3636 = vmatmul.mubr.msk.f32.vlgmr.msra.gmra.mxu0 %vm56_vm0, %v4391_v8  ;;  %3638 = vmatmul.mubr.msk.f32.vlgmr.msra.gmra.mxu1 %vm56_vm0, %v4391_v8  ;;  %v48_v15 = vld [vmem:[%s5361_s0 + $0x20] sm:$0xff] }
   0x7   :  { %133 = vmatprep.mubr.f32.mxu0 %v4291_v9  ;;  %210 = vmatprep.mubr.f32.mxu1 %v4291_v9 }
   0x8   :  { %245 = vmatprep.subr.mxu0 %v55_v10  ;;  %4025 = vset.pattern.permute.xlu0 %v4292_v16 }
   0x9   :  { %246 = vmatpush1.msra.mxu0 %v54_v11  ;;  %296 = vperm.xlu0 %4025, %v4403_v12  }
   0xa   :  { %3637 = vmatmul.mubr.msk.f32.gmra.mxu0 %vm56_vm0, %v4409_v13  ;;  %3639 = vmatmul.mubr.msk.f32.gmra.mxu1 %vm56_vm0, %v4409_v13 }
   0xb   :  { %247 = vmatprep.subr.mxu0 %v49_v14  ;;  %281 = vmatprep.mubr.f32.mxu0 %v4291_v9 }
   0xc   :  { %248 = vmatpush1.msra.mxu0 %v48_v15  ;;  %595 = vmatprep.mubr.f32.mxu1 %v4291_v9 }
   0xd   :  { %4026 = vset.pattern.permute.xlu0 %v4293_v17 }
   0xe   :  { %3640 = vmatmul.mubr.msk.f32.vlgmr.msra.gmra.mxu0 %vm56_vm0, %v4391_v8  ;;  %306 = vperm.xlu0 %4026, %v4403_v12  }
   0xf   :  { %287 = vmatprep.mubr.f32.mxu0 %v4291_v9 }
  0x12   :  { %3641 = vmatmul.mubr.msk.f32.gmra.mxu0 %vm56_vm0, %v4409_v13 }
  0x13   :  { %672 = vmatprep.mubr.f32.mxu0 %v4291_v9 }
  0x14   :  { %17 = vsyncpa [#allocation8], 0  ;;  %vm37_vm1 = vcmask 499168   ;;  %s4294_s23 = smov 1   ;;  %s4295_s24 = smov 2   ;;  %vm414_vm2 = vcmask 490496  }
  0x15   :  { %38 = vst.msk [vmem:[#allocation2 + $0x88] sm:$0xff] %vm37_vm1, %v4291_v9  ;;  %s4296_s25 = smov 127   ;;  %vm357_vm3 = vcmask 15360   ;;  %vm389_vm4 = vcmask 7168   ;;  %vm35_vm5 = vcmask 15368   ;;  %vm492_vm6 = vcmask 1039360  }
  0x16   :  { %36 = vst.msk [vmem:[#allocation2] sm:$0xff] %vm35_vm5, %v4291_v9  ;;  %s4297_s26 = smov 112   ;;  %vm526_vm7 = vcmask 195584   ;;  %vm369_vm8 = vcmask 1047568   ;;  %vm401_vm9 = vcmask 1047560   ;;  %vm375_vm10 = vcmask 506880  }
  0x17   :  { %vm407_vm11 = vcmask 498688   ;;  %vm1175_vm12 = vcmask 1045504   ;;  %vm4300_vm13 = vmmov 0   ;;  %vm2558_vm14 = vcmask 261120  }
  0x18   :  { %vm3409_vm15 = vcmask 261127  }
  0x84   :  { %v4439_v18 = vpop.permute.xlu0 %296 }
  0x89   :  { %v4442_v24 = vpop.permute.xlu0 %306 }
  0xc6   :  { %v129_v19 = vpop.f32.mrf.mxu0  ;;  %v206_v20 = vpop.f32.mrf.mxu1 }
  0xc7   :  { %v301_v21 = vmul.f32 %v4439_v18, %v206_v20  ;;  %v299_v25 = vmul.f32 %v4439_v18, %v129_v19 }
  0xc8   :  { %v131_v22 = vpop.f32.mrf.mxu0  ;;  %v208_v23 = vpop.f32.mrf.mxu1 }
  0xc9   :  { %v300_v28 = vmul.f32 %v4439_v18, %v131_v22  ;;  %v302_v31 = vmul.f32 %v4439_v18, %v208_v23  ;;  %v311_v34 = vadd.f32 %v4442_v24, %v301_v21  ;;  %v4457_v40 = vadd.f32 %v4442_v24, %v299_v25 }
  0xca   :  { %v135_v26 = vpop.f32.mrf.mxu0  ;;  %v212_v27 = vpop.f32.mrf.mxu1 }
  0xcb   :  { %v315_v29 = vmul.f32 %v4439_v18, %v135_v26  ;;  %v317_v30 = vmul.f32 %v4439_v18, %v212_v27  ;;  %v310_v41 = vadd.f32 %v4442_v24, %v300_v28  ;;  %v312_v47 = vadd.f32 %v4442_v24, %v302_v31 }
  0xcc   :  { %v137_v32 = vpop.f32.mrf.mxu0  ;;  %v214_v33 = vpop.f32.mrf.mxu1 }
  0xcd   :  { %v4451_v35 = vadd.f32 %v315_v29, %v4442_v24  ;;  %v323_v36 = vadd.f32 %v317_v30, %v4442_v24  ;;  %v316_v37 = vmul.f32 %v4439_v18, %v137_v32  ;;  %v318_v38 = vmul.f32 %v4439_v18, %v214_v33 }
  0xce   :  { %v283_v39 = vpop.f32.mrf.mxu0 }
  0xcf   :  { %v322_v42 = vadd.f32 %v316_v37, %v4442_v24  ;;  %v324_v43 = vadd.f32 %v318_v38, %v4442_v24  ;;  %v329_v44 = vmax.f32 %v311_v34, %v323_v36  ;;  %v327_v46 = vmax.f32 %v4457_v40, %v4451_v35 }
  0xd0   :  { %v285_v45 = vpop.f32.mrf.mxu0  ;;  %v303_v50 = vmul.f32 %v4439_v18, %v283_v39 }
  0xd1   :  { %v335_v48 = vmax.f32 %v329_v44, 0.0  ;;  %v328_v49 = vmax.f32 %v310_v41, %v322_v42  ;;  %v304_v52 = vmul.f32 %v4439_v18, %v285_v45  ;;  %v330_v55 = vmax.f32 %v312_v47, %v324_v43 }
  0xd2   :  { %v289_v51 = vpop.f32.mrf.mxu0  ;;  %v313_v59 = vadd.f32 %v4442_v24, %v303_v50  ;;  %v333_v27 = vmax.f32 %v327_v46, 0.0 }
  0xd3   :  { %v319_v53 = vmul.f32 %v4439_v18, %v289_v51  ;;  %381 = vrot.lane.b32.xlu1 %v335_v48, %s4294_s23  ;;  %v4469_v54 = vmax.f32 %v328_v49, 0.0  ;;  %v314_v60 = vadd.f32 %v4442_v24, %v304_v52  ;;  %v336_v62 = vmax.f32 %v330_v55, 0.0 }
  0xd4   :  { %v291_v56 = vpop.f32.mrf.mxu0 }
  0xd5   :  { %v325_v57 = vadd.f32 %v319_v53, %v4442_v24  ;;  %v320_v58 = vmul.f32 %v4439_v18, %v291_v56  ;;  %379 = vrot.lane.b32.xlu0 %v4469_v54, %s4294_s23 }
  0xd7   :  { %v326_v61 = vadd.f32 %v320_v58, %v4442_v24  ;;  %349 = vrot.lane.b32.xlu1 %v335_v48, %s4295_s24  ;;  %v331_v63 = vmax.f32 %v313_v59, %v325_v57  ;;  %v42_v57 = vld [vmem:[%s5363_s2 + $0x8] sm:$0xff]  ;;  %v4299_v59 = vmov 3   ;;  %s4302_s2 = smov 64  }
  0xd9   :  { %351 = vrot.lane.b32.xlu0 %v336_v62, %s4295_s24  ;;  %v332_v0 = vmax.f32 %v314_v60, %v326_v61  ;;  %v337_v2 = vmax.f32 %v331_v63, 0.0  ;;  %v4047_v60 = vld [vmem:[%s5364_s3 + $0x78] sm:$0xff]   ;;  %v4050_v63 = vld [vmem:[%s5364_s3 + $0x30] sm:$0xff]  }
  0xda   :  { %v4048_v61 = vld [vmem:[%s5364_s3 + $0x38] sm:$0xff]  }
  0xdb   :  { %383 = vrot.lane.b32.xlu1 %v336_v62, %s4294_s23  ;;  %v338_v1 = vmax.f32 %v332_v0, 0.0  ;;  %v4052_v0 = vld [vmem:[%s5364_s3 + $0x28] sm:$0xff]  }
  0xdd   :  { %347 = vrot.lane.b32.xlu0 %v4469_v54, %s4295_s24  ;;  %415 = vst.msk [vmem:[#allocation2 + $0x88] sm:$0xff] %vm414_vm2, %v338_v1 }
  0xdf   :  { %385 = vrot.lane.b32.xlu1 %v337_v2, %s4294_s23 }
  0xe1   :  { %488 = vrot.lane.b32.xlu0 %v337_v2, %s4296_s25 }
  0xe3   :  { %353 = vrot.lane.b32.xlu1 %v337_v2, %s4295_s24  ;;  %v4054_v2 = vld [vmem:[%s5364_s3 + $0x20] sm:$0xff]  }
  0xe7   :  { %484 = vrot.lane.b32.xlu1 %v335_v48, %s4296_s25 }
  0xeb   :  { %486 = vrot.lane.b32.xlu1 %v336_v62, %s4296_s25  ;;  %v4049_v62 = vld [vmem:[%s5364_s3 + $0x70] sm:$0xff]  }
 0x145   :  { %v382_v3 = vpop.permute.xlu1 %381 }
 0x147   :  { %v4489_v4 = vpop.permute.xlu0 %379 }
 0x148   :  { %v391_v15 = vsel %vm389_vm4, %v4489_v4, %v382_v3 }
 0x149   :  { %v350_v5 = vpop.permute.xlu1 %349 }
 0x14b   :  { %v352_v6 = vpop.permute.xlu0 %351 }
 0x14c   :  { %v360_v7 = vsel %vm357_vm3, %v350_v5, %v352_v6 }
 0x14d   :  { %v384_v10 = vpop.permute.xlu1 %383  ;;  %462 = vrot.lane.b32.xlu1 %v360_v7, %s4296_s25 }
 0x14e   :  { %v392_v11 = vsel %vm389_vm4, %v382_v3, %v384_v10 }
 0x14f   :  { %474 = vrot.lane.b32.xlu0 %v392_v11, %s4296_s25  ;;  %v4502_v19 = vpop.permute.xlu0 %347 }
 0x150   :  { %v359_v21 = vsel %vm357_vm3, %v4502_v19, %v350_v5 }
 0x151   :  { %v4495_v14 = vpop.permute.xlu1 %385 }
 0x152   :  { %v393_v17 = vsel %vm389_vm4, %v384_v10, %v4495_v14 }
 0x153   :  { %476 = vrot.lane.b32.xlu1 %v393_v17, %s4296_s25  ;;  %472 = vrot.lane.b32.xlu0 %v391_v15, %s4296_s25  ;;  %v4515_v25 = vpop.permute.xlu0 %488 }
 0x155   :  { %v354_v20 = vpop.permute.xlu1 %353 }
 0x156   :  { %v361_v22 = vsel %vm357_vm3, %v352_v6, %v354_v20 }
 0x157   :  { %460 = vrot.lane.b32.xlu1 %v359_v21, %s4296_s25  ;;  %464 = vrot.lane.b32.xlu0 %v361_v22, %s4296_s25 }
 0x159   :  { %v4511_v23 = vpop.permute.xlu1 %484 }
 0x15b   :  { %436 = vrot.lane.b32.xlu1 %v4409_v13, %s4297_s26  ;;  %434 = vrot.lane.b32.xlu0 %v4391_v8, %s4297_s26  ;;  %v4298_v8 = vmov 2   ;;  %s4303_s26 = smov 96  }
 0x15c   :  { %4027 = vset.pattern.permute.xlu1 %v4298_v8  ;;  %4028 = vset.pattern.permute.xlu0 %v4298_v8  ;;  %v4036_v8 = vld [vmem:[%s5364_s3 + $0xa8] sm:$0xff]  }
 0x15d   :  { %v487_v26 = vpop.permute.xlu1 %486 }
 0x15e   :  { %v506_v28 = vsel %vm492_vm6, %v487_v26, %v4515_v25  ;;  %v505_v29 = vsel %vm492_vm6, %v4511_v23, %v487_v26  ;;  %v4032_v26 = vld [vmem:[%s5364_s3 + $0xb8] sm:$0xff]  }
 0x15f   :  { %634 = vmatprep.subr.mxu0 %v506_v28  ;;  %345 = vrot.lane.b32.xlu1 %v333_v27, %s4295_s24  ;;  %v4034_v28 = vld [vmem:[%s5364_s3 + $0xb0] sm:$0xff]  }
 0x160   :  { %635 = vmatpush1.msra.mxu0 %v505_v29  ;;  %377 = vrot.lane.b32.xlu0 %v333_v27, %s4294_s23  ;;  %v4035_v29 = vld [vmem:[%s5364_s3 + $0xe8] sm:$0xff]  }
 0x163   :  { %355 = vrot.lane.b32.xlu1 %v338_v1, %s4295_s24 }
 0x164   :  { %387 = vrot.lane.b32.xlu0 %v338_v1, %s4294_s23  ;;  %v4053_v1 = vld [vmem:[%s5364_s3 + $0x60] sm:$0xff]  }
 0x167   :  { %480 = vrot.lane.b32.xlu1 %v333_v27, %s4296_s25  ;;  %v4033_v27 = vld [vmem:[%s5364_s3 + $0xf0] sm:$0xff]  }
 0x168   :  { %482 = vrot.lane.b32.xlu0 %v4469_v54, %s4296_s25  ;;  %v433_v54 = vld [vmem:[#allocation2 + $0x88] sm:$0xff] }
 0x1bf   :  { %v463_v13 = vpop.permute.xlu1 %462 }
 0x1c1   :  { %v475_v30 = vpop.permute.xlu0 %474 }
 0x1c5   :  { %v4531_v31 = vpop.permute.xlu1 %476  ;;  %v4533_v32 = vpop.permute.xlu0 %472 }
 0x1c6   :  { %v501_v33 = vsel %vm492_vm6, %v475_v30, %v4531_v31  ;;  %v500_v34 = vsel %vm492_vm6, %v4533_v32, %v475_v30  ;;  %v4038_v30 = vld [vmem:[%s5364_s3 + $0xa0] sm:$0xff]  }
 0x1c7   :  { %636 = vmatprep.subr.mxu0 %v501_v33  ;;  %v4041_v33 = vld [vmem:[%s5364_s3 + $0xd0] sm:$0xff]  }
 0x1c8   :  { %637 = vmatpush1.msra.mxu0 %v500_v34  ;;  %v4042_v34 = vld [vmem:[%s5364_s3 + $0x90] sm:$0xff]  }
 0x1c9   :  { %v4539_v35 = vpop.permute.xlu1 %460  ;;  %v4541_v36 = vpop.permute.xlu0 %464 }
 0x1ca   :  { %v496_v37 = vsel %vm492_vm6, %v463_v13, %v4541_v36  ;;  %v495_v38 = vsel %vm492_vm6, %v4539_v35, %v463_v13  ;;  %v4037_v13 = vld [vmem:[%s5364_s3 + $0xe0] sm:$0xff]  }
 0x1cb   :  { %638 = vmatprep.subr.mxu0 %v496_v37  ;;  %v4045_v37 = vld [vmem:[%s5364_s3 + $0xc0] sm:$0xff]  }
 0x1cc   :  { %639 = vmatpush1.msra.mxu0 %v495_v38  ;;  %v4046_v38 = vld [vmem:[%s5364_s3 + $0x80] sm:$0xff]  }
 0x1cd   :  { %v4547_v39 = vpop.permute.xlu1 %436  ;;  %v4549_v40 = vpop.permute.xlu0 %434  ;;  %3800 = vmatprep.subr.bf16.mxu0 %v4047_v60 }
 0x1ce   :  { %3644 = vmatmul.mubr.msk.f32.vlgmr.msra.gmra.mxu0 %vm526_vm7, %v4549_v40 }
 0x1cf   :  { %678 = vmatprep.mubr.f32.mxu0 %v4291_v9  ;;  %3801 = vmatpush3.bf16.msra.mxu0 %v4048_v61 }
 0x1d0   :  { %3802 = vmatprep.subr.bf16.mxu0 %v4049_v62 }
 0x1d1   :  { %v346_v41 = vpop.permute.xlu1 %345 }
 0x1d2   :  { %370 = vst.msk [vmem:[#allocation2] sm:$0xff] %vm369_vm8, %v346_v41  ;;  %v378_v42 = vpop.permute.xlu0 %377  ;;  %3645 = vmatmul.mubr.msk.f32.gmra.mxu0 %vm526_vm7, %v4547_v39  ;;  %v358_v47 = vsel %vm357_vm3, %v346_v41, %v4502_v19  ;;  %v3701_v41 = vld [vmem:[%s5361_s0 + $0x98] sm:$0xff] }
 0x1d3   :  { %v390_v43 = vsel %vm389_vm4, %v378_v42, %v4489_v4  ;;  %402 = vst.msk [vmem:[#allocation2 + $0x30] sm:$0xff] %vm401_vm9, %v378_v42  ;;  %3803 = vmatpush3.bf16.msra.mxu0 %v4050_v63  ;;  %v4055_v4 = vld [vmem:[%s5364_s3 + $0x58] sm:$0xff]  }
 0x1d4   :  { %470 = vrot.lane.b32.xlu0 %v390_v43, %s4296_s25 }
 0x1d5   :  { %v356_v44 = vpop.permute.xlu1 %355 }
 0x1d6   :  { %v362_v45 = vsel %vm357_vm3, %v354_v20, %v356_v44  ;;  %v388_v46 = vpop.permute.xlu0 %387 }
 0x1d7   :  { %376 = vst.msk [vmem:[#allocation2 + $0x28] sm:$0xff] %vm375_vm10, %v362_v45  ;;  %v394_v48 = vsel %vm389_vm4, %v4495_v14, %v388_v46 }
 0x1d8   :  { %408 = vst.msk [vmem:[#allocation2 + $0x58] sm:$0xff] %vm407_vm11, %v394_v48  ;;  %458 = vrot.lane.b32.xlu0 %v358_v47, %s4296_s25 }
 0x1d9   :  { %v481_v49 = vpop.permute.xlu1 %480  ;;  %v416_v55 = vld [vmem:[#allocation2] sm:$0xff] }
 0x1da   :  { %v483_v50 = vpop.permute.xlu0 %482  ;;  %v422_v51 = vld [vmem:[#allocation2 + $0x30] sm:$0xff] }
 0x1db   :  { %v503_v52 = vsel %vm492_vm6, %v481_v49, %v483_v50  ;;  %468 = vrot.lane.b32.xlu1 %v422_v51, %s4296_s25  ;;  %v504_v53 = vsel %vm492_vm6, %v483_v50, %v4511_v23  ;;  %v4031_v23 = vld [vmem:[%s5364_s3 + $0xf8] sm:$0xff]  }
 0x1dc   :  { %557 = vmatprep.subr.mxu1 %v504_v53  ;;  %490 = vrot.lane.b32.xlu0 %v433_v54, %s4296_s25  ;;  %v4056_v50 = vld [vmem:[%s5364_s3 + $0x18] sm:$0xff]  }
 0x1dd   :  { %558 = vmatpush1.msra.mxu1 %v503_v52 }
 0x1de   :  { %v421_v56 = vld [vmem:[#allocation2 + $0x28] sm:$0xff] }
 0x1df   :  { %456 = vrot.lane.b32.xlu1 %v416_v55, %s4296_s25  ;;  %v427_v58 = vld [vmem:[#allocation2 + $0x58] sm:$0xff] }
 0x1e0   :  { %466 = vrot.lane.b32.xlu0 %v421_v56, %s4296_s25 }
 0x1e3   :  { %478 = vrot.lane.b32.xlu1 %v427_v58, %s4296_s25 }
 0x1e4   :  { %768 = vperm.xlu0 %4028, %v42_v57  }
 0x1e7   :  { %763 = vperm.xlu1 %4027, %v4403_v12  }
 0x1e8   :  { %4030 = vset.pattern.permute.xlu0 %v4299_v59 }
 0x1eb   :  { %4029 = vset.pattern.permute.xlu1 %v4299_v59  ;;  %v4058_v59 = vld [vmem:[%s5364_s3 + $0x10] sm:$0xff]  }
 0x1ec   :  { %784 = vperm.xlu1 %4029, %v4403_v12   ;;  %v4051_v12 = vld [vmem:[%s5364_s3 + $0x68] sm:$0xff]  }
 0x1ed   :  { %3804 = vmatprep.subr.bf16.mxu0 %v4051_v12  ;;  %v4059_v12 = vld [vmem:[%s5364_s3 + $0x48] sm:$0xff]  }
 0x1ee   :  { %3805 = vmatpush3.bf16.msra.mxu0 %v4052_v0 }
 0x1ef   :  { %3806 = vmatprep.subr.bf16.mxu0 %v4053_v1  ;;  %v4060_v1 = vld [vmem:[%s5364_s3 + $0x8] sm:$0xff]  }
 0x1f0   :  { %788 = vperm.xlu1 %4029, %v42_v57   ;;  %v4057_v57 = vld [vmem:[%s5364_s3 + $0x50] sm:$0xff]  }
 0x1f2   :  { %3807 = vmatpush3.bf16.msra.mxu0 %v4054_v2 }
 0x1f3   :  { %3808 = vmatprep.subr.bf16.mxu0 %v4055_v4  ;;  %v3700_v4 = vld [vmem:[%s5361_s0 + $0x90] sm:$0xff] }
 0x1f6   :  { %3809 = vmatpush3.bf16.msra.mxu0 %v4056_v50  ;;  %v4063_v50 = vld [vmem:[%s5364_s3 + $0x138] sm:$0xff]  }
 0x1f7   :  { %3810 = vmatprep.subr.bf16.mxu0 %v4057_v57  ;;  %v4064_v57 = vld [vmem:[%s5364_s3 + $0x130] sm:$0xff]  }
 0x1fa   :  { %3811 = vmatpush3.bf16.msra.mxu0 %v4058_v59 }
 0x1fb   :  { %3812 = vmatprep.subr.bf16.mxu0 %v4059_v12  ;;  %v4068_v12 = vld [vmem:[%s5364_s3 + $0x110] sm:$0xff]  }
 0x1fe   :  { %3813 = vmatpush3.bf16.msra.mxu0 %v4060_v1  ;;  %v4070_v1 = vld [vmem:[%s5364_s3 + $0x100] sm:$0xff]  }
 0x246   :  { %v471_v3 = vpop.permute.xlu0 %470 }
 0x247   :  { %v499_v5 = vsel %vm492_vm6, %v471_v3, %v4533_v32  ;;  %v4040_v32 = vld [vmem:[%s5364_s3 + $0x98] sm:$0xff]  }
 0x248   :  { %559 = vmatprep.subr.mxu1 %v499_v5  ;;  %v3695_v5 = vld [vmem:[%s5361_s0 + $0x68] sm:$0xff] }
 0x24a   :  { %v459_v6 = vpop.permute.xlu0 %458 }
 0x24b   :  { %v494_v11 = vsel %vm492_vm6, %v459_v6, %v4539_v35  ;;  %v4043_v35 = vld [vmem:[%s5364_s3 + $0xc8] sm:$0xff]  }
 0x24d   :  { %v469_v7 = vpop.permute.xlu1 %468 }
 0x24e   :  { %v498_v10 = vsel %vm492_vm6, %v469_v7, %v471_v3  ;;  %v491_v14 = vpop.permute.xlu0 %490  ;;  %v3694_v7 = vld [vmem:[%s5361_s0 + $0x60] sm:$0xff] }
 0x24f   :  { %560 = vmatpush1.msra.mxu1 %v498_v10  ;;  %v507_v19 = vsel %vm492_vm6, %v4515_v25, %v491_v14  ;;  %v4062_v10 = vld [vmem:[%s5364_s3] sm:$0xff]  }
 0x250   :  { %561 = vmatprep.subr.mxu1 %v494_v11  ;;  %v3703_v11 = vld [vmem:[%s5361_s0 + $0xa8] sm:$0xff] }
 0x251   :  { %v457_v15 = vpop.permute.xlu1 %456 }
 0x252   :  { %v493_v17 = vsel %vm492_vm6, %v457_v15, %v459_v6  ;;  %v467_v21 = vpop.permute.xlu0 %466  ;;  %v4061_v6 = vld [vmem:[%s5364_s3 + $0x40] sm:$0xff]   ;;  %v3697_v15 = vld [vmem:[%s5361_s0 + $0x78] sm:$0xff] }
 0x253   :  { %562 = vmatpush1.msra.mxu1 %v493_v17  ;;  %v497_v25 = vsel %vm492_vm6, %v4541_v36, %v467_v21  ;;  %v4044_v36 = vld [vmem:[%s5364_s3 + $0x88] sm:$0xff]   ;;  %3814 = vmatprep.subr.bf16.mxu0 %v4061_v6  ;;  %v4225_v17 = vld [vmem:[%s5362_s1] sm:$0xff] }
 0x254   :  { %3642 = vmatmul.mubr.msk.f32.vlgmr.msra.gmra.mxu1 %vm526_vm7, %v4549_v40  ;;  %711 = vmatprep.subr.mxu1 %v491_v14  ;;  %v3702_v14 = vld [vmem:[%s5361_s0 + $0xa0] sm:$0xff] }
 0x255   :  { %v479_v20 = vpop.permute.xlu1 %478  ;;  %712 = vmatpush1.msra.mxu1 %v507_v19  ;;  %601 = vmatprep.mubr.f32.mxu1 %v4291_v9  ;;  %v3696_v19 = vld [vmem:[%s5361_s0 + $0x70] sm:$0xff] }
 0x256   :  { %v502_v22 = vsel %vm492_vm6, %v4531_v31, %v479_v20  ;;  %713 = vmatprep.subr.mxu1 %v479_v20  ;;  %v4039_v31 = vld [vmem:[%s5364_s3 + $0xd8] sm:$0xff]   ;;  %3815 = vmatpush3.bf16.msra.mxu0 %v4062_v10 }
 0x257   :  { %714 = vmatpush1.msra.mxu1 %v502_v22  ;;  %1261 = vmatprep.subr.bf16.mxu0 %v4292_v16  ;;  %v3705_v20 = vld [vmem:[%s5361_s0 + $0xb8] sm:$0xff]  ;;  %v3704_v22 = vld [vmem:[%s5361_s0 + $0xb0] sm:$0xff] }
 0x258   :  { %3643 = vmatmul.mubr.msk.f32.gmra.mxu1 %vm526_vm7, %v4547_v39  ;;  %715 = vmatprep.subr.mxu1 %v467_v21  ;;  %v4226_v21 = vld [vmem:[%s5362_s1 + $0x8] sm:$0xff] }
 0x259   :  { %716 = vmatpush1.msra.mxu1 %v497_v25  ;;  %749 = vmatprep.mubr.f32.mxu1 %v4291_v9  ;;  %v3698_v25 = vld [vmem:[%s5361_s0 + $0x80] sm:$0xff] }
 0x25a   :  { %3822 = vmatprep.subr.bf16.mxu1 %v4031_v23  ;;  %v3699_v23 = vld [vmem:[%s5361_s0 + $0x88] sm:$0xff] }
 0x25c   :  { %3646 = vmatmul.mubr.msk.f32.vlgmr.msra.gmra.mxu1 %vm526_vm7, %v4549_v40 }
 0x25d   :  { %755 = vmatprep.mubr.f32.mxu1 %v4291_v9  ;;  %3823 = vmatpush3.bf16.msra.mxu1 %v4032_v26 }
 0x25e   :  { %3824 = vmatprep.subr.bf16.mxu1 %v4033_v27 }
 0x25f   :  { %v4687_v46 = vpop.permute.xlu0 %768 }
 0x260   :  { %3647 = vmatmul.mubr.msk.f32.gmra.mxu1 %vm526_vm7, %v4547_v39 }
 0x261   :  { %3825 = vmatpush3.bf16.msra.mxu1 %v4034_v28 }
 0x262   :  { %3826 = vmatprep.subr.bf16.mxu1 %v4035_v29  ;;  %v4683_v42 = vpop.permute.xlu1 %763 }
 0x265   :  { %3827 = vmatpush3.bf16.msra.mxu1 %v4036_v8 }
 0x266   :  { %3828 = vmatprep.subr.bf16.mxu1 %v4037_v13 }
 0x267   :  { %v4685_v44 = vpop.permute.xlu1 %784 }
 0x269   :  { %3829 = vmatpush3.bf16.msra.mxu1 %v4038_v30 }
 0x26a   :  { %3830 = vmatprep.subr.bf16.mxu1 %v4039_v31 }
 0x26b   :  { %v4695_v52 = vpop.permute.xlu1 %788 }
 0x26d   :  { %3831 = vmatpush3.bf16.msra.mxu1 %v4040_v32 }
 0x26e   :  { %3832 = vmatprep.subr.bf16.mxu1 %v4041_v33 }
 0x271   :  { %3833 = vmatpush3.bf16.msra.mxu1 %v4042_v34 }
 0x272   :  { %3834 = vmatprep.subr.bf16.mxu1 %v4043_v35 }
 0x275   :  { %3835 = vmatpush3.bf16.msra.mxu1 %v4044_v36 }
 0x276   :  { %3836 = vmatprep.subr.bf16.mxu1 %v4045_v37 }
 0x279   :  { %3837 = vmatpush3.bf16.msra.mxu1 %v4046_v38 }
 0x27a   :  { %1351 = vmatprep.subr.mxu1 %v3701_v41 }
 0x28e   :  { %v674_v43 = vpop.f32.mrf.mxu0 }
 0x28f   :  { %v773_v48 = vmul.f32 %v4683_v42, %v674_v43 }
 0x290   :  { %v676_v45 = vpop.f32.mrf.mxu0 }
 0x291   :  { %v774_v47 = vmul.f32 %v4683_v42, %v676_v45  ;;  %v793_v58 = vadd.f32 %v4685_v44, %v773_v48 }
 0x292   :  { %v680_v49 = vpop.f32.mrf.mxu0 }
 0x293   :  { %v779_v51 = vmul.f32 %v4687_v46, %v680_v49  ;;  %v794_v54 = vadd.f32 %v4685_v44, %v774_v47  ;;  %v805_v0 = vmax.f32 %v793_v58, 0.0 }
 0x294   :  { %v682_v53 = vpop.f32.mrf.mxu0 }
 0x295   :  { %v780_v55 = vmul.f32 %v4687_v46, %v682_v53  ;;  %v799_v56 = vadd.f32 %v4695_v52, %v779_v51  ;;  %v806_v62 = vmax.f32 %v794_v54, 0.0 }
 0x297   :  { %v800_v60 = vadd.f32 %v4695_v52, %v780_v55  ;;  %v811_v61 = vmax.f32 %v799_v56, 0.0 }
 0x299   :  { %v812_v63 = vmax.f32 %v800_v60, 0.0  ;;  %v817_v3 = vpack.c.bf16 %v811_v61, %v805_v0  ;;  %v4065_v61 = vld [vmem:[%s5364_s3 + $0x128] sm:$0xff]  }
 0x29a   :  { %v4069_v0 = vld [vmem:[%s5364_s3 + $0x108] sm:$0xff]  }
 0x29b   :  { %v818_v2 = vpack.c.bf16 %v812_v63, %v806_v62  ;;  %v4066_v62 = vld [vmem:[%s5364_s3 + $0x120] sm:$0xff]   ;;  %v4067_v63 = vld [vmem:[%s5364_s3 + $0x118] sm:$0xff]  }
 0x29d   :  { %1252 = vmatprep.mubr.bf16.mxu1 %v818_v2  ;;  %v4071_v2 = vld [vmem:[%s5364_s3 + $0x158] sm:$0x3f]  }
 0x29e   :  { %1253 = vmatmul.mubr.bf16.vlgmr.msra.gmra.mxu1 %v817_v3  ;;  %v1177_v3 = vsel %vm1175_vm12, %v4071_v2, 0 }
 0x29f   :  { %1352 = vmatpush1.msra.mxu1 %v3700_v4  ;;  %1387 = vmatprep.mubr.f32.mxu1 %v4291_v9  ;;  %v4072_v4 = vld [vmem:[%s5364_s3 + $0x150] sm:$0xff]  }
 0x2a0   :  { %1353 = vmatprep.subr.mxu1 %v3695_v5 }
 0x2a1   :  { %1354 = vmatpush1.msra.mxu1 %v3694_v7  ;;  %v4073_v7 = vld [vmem:[%s5364_s3 + $0x148] sm:$0xff]  }
 0x2a2   :  { %1428 = vmatprep.subr.mxu1 %v3703_v11 }
 0x2a6   :  { %3706 = vmatmul.mubr.msk.f32.vlgmr.msra.gmra.mxu1 %vm56_vm0, %v4225_v17 }
 0x2a7   :  { %1429 = vmatpush1.msra.mxu1 %v3702_v14  ;;  %1393 = vmatprep.mubr.f32.mxu1 %v4291_v9  ;;  %v4074_v14 = vld [vmem:[%s5364_s3 + $0x140] sm:$0xff]  }
 0x2a8   :  { %1430 = vmatprep.subr.mxu1 %v3697_v15 }
 0x2a9   :  { %1431 = vmatpush1.msra.mxu1 %v3696_v19 }
 0x2aa   :  { %3707 = vmatmul.mubr.msk.f32.gmra.mxu1 %vm56_vm0, %v4226_v21  ;;  %1505 = vmatprep.subr.mxu1 %v3705_v20 }
 0x2ab   :  { %1464 = vmatprep.mubr.f32.mxu1 %v4291_v9 }
 0x2ae   :  { %3708 = vmatmul.mubr.msk.f32.vlgmr.msra.gmra.mxu1 %vm56_vm0, %v4225_v17 }
 0x2af   :  { %1470 = vmatprep.mubr.f32.mxu1 %v4291_v9  ;;  %1506 = vmatpush1.msra.mxu1 %v3704_v22 }
 0x2b0   :  { %1507 = vmatprep.subr.mxu1 %v3699_v23 }
 0x2b1   :  { %1508 = vmatpush1.msra.mxu1 %v3698_v25 }
 0x2b2   :  { %3709 = vmatmul.mubr.msk.f32.gmra.mxu1 %vm56_vm0, %v4226_v21 }
 0x2b3   :  { %1541 = vmatprep.mubr.f32.mxu1 %v4291_v9 }
 0x2b6   :  { %3710 = vmatmul.mubr.msk.f32.vlgmr.msra.gmra.mxu1 %vm56_vm0, %v4225_v17 }
 0x2b7   :  { %1547 = vmatprep.mubr.f32.mxu1 %v4291_v9 }
 0x2ba   :  { %3711 = vmatmul.mubr.msk.f32.gmra.mxu1 %vm56_vm0, %v4226_v21 }
 0x2bb   :  { %1829 = vmatprep.mubr.f32.mxu1 %v4291_v9 }
 0x314   :  { %v597_v26 = vpop.f32.mrf.mxu1 }
 0x315   :  { %v771_v29 = vmul.f32 %v4683_v42, %v597_v26 }
 0x316   :  { %v599_v27 = vpop.f32.mrf.mxu1 }
 0x317   :  { %v772_v28 = vmul.f32 %v4683_v42, %v599_v27  ;;  %v791_v34 = vadd.f32 %v4685_v44, %v771_v29 }
 0x318   :  { %v603_v8 = vpop.f32.mrf.mxu1 }
 0x319   :  { %v777_v13 = vmul.f32 %v4687_v46, %v603_v8  ;;  %v792_v31 = vadd.f32 %v4685_v44, %v772_v28  ;;  %v803_v47 = vmax.f32 %v791_v34, 0.0 }
 0x31a   :  { %v605_v30 = vpop.f32.mrf.mxu1 }
 0x31b   :  { %v797_v32 = vadd.f32 %v4695_v52, %v777_v13  ;;  %v778_v33 = vmul.f32 %v4687_v46, %v605_v30  ;;  %v804_v41 = vmax.f32 %v792_v31, 0.0 }
 0x31c   :  { %v751_v35 = vpop.f32.mrf.mxu1 }
 0x31d   :  { %v798_v36 = vadd.f32 %v4695_v52, %v778_v33  ;;  %v809_v37 = vmax.f32 %v797_v32, 0.0  ;;  %v775_v6 = vmul.f32 %v4683_v42, %v751_v35 }
 0x31e   :  { %v753_v38 = vpop.f32.mrf.mxu1 }
 0x31f   :  { %v810_v43 = vmax.f32 %v798_v36, 0.0  ;;  %v776_v45 = vmul.f32 %v4683_v42, %v753_v38  ;;  %v815_v51 = vpack.c.bf16 %v809_v37, %v803_v47  ;;  %v795_v11 = vadd.f32 %v4685_v44, %v775_v6 }
 0x320   :  { %v757_v48 = vpop.f32.mrf.mxu1 }
 0x321   :  { %v816_v49 = vpack.c.bf16 %v810_v43, %v804_v41  ;;  %v796_v54 = vadd.f32 %v4685_v44, %v776_v45  ;;  %v781_v5 = vmul.f32 %v4687_v46, %v757_v48  ;;  %v807_v17 = vmax.f32 %v795_v11, 0.0 }
 0x322   :  { %v759_v53 = vpop.f32.mrf.mxu1 }
 0x323   :  { %v782_v55 = vmul.f32 %v4687_v46, %v759_v53  ;;  %1211 = vmatprep.mubr.bf16.mxu0 %v816_v49  ;;  %v808_v58 = vmax.f32 %v796_v54, 0.0  ;;  %v801_v10 = vadd.f32 %v4695_v52, %v781_v5 }
 0x324   :  { %1212 = vmatmul.mubr.bf16.vlgmr.msra.gmra.mxu0 %v815_v51 }
 0x325   :  { %v802_v56 = vadd.f32 %v4695_v52, %v782_v55  ;;  %1262 = vmatpush1.bf16.msra.mxu0 %v4063_v50  ;;  %v813_v15 = vmax.f32 %v801_v10, 0.0 }
 0x326   :  { %1263 = vmatprep.subr.bf16.mxu0 %v4292_v16 }
 0x327   :  { %v814_v59 = vmax.f32 %v802_v56, 0.0  ;;  %v819_v19 = vpack.c.bf16 %v813_v15, %v807_v17 }
 0x329   :  { %v820_v60 = vpack.c.bf16 %v814_v59, %v808_v58  ;;  %1264 = vmatpush1.bf16.msra.mxu0 %v4064_v57 }
 0x32a   :  { %1265 = vmatprep.subr.bf16.mxu0 %v4292_v16 }
 0x32b   :  { %3692 = vmatprep.mubr.msk.bf16.mxu0 %vm414_vm2, %v820_v60 }
 0x32d   :  { %1266 = vmatpush1.bf16.msra.mxu0 %v4065_v61 }
 0x32e   :  { %1267 = vmatprep.subr.bf16.mxu0 %v4292_v16 }
 0x331   :  { %1268 = vmatpush1.bf16.msra.mxu0 %v4066_v62 }
 0x332   :  { %1269 = vmatprep.subr.bf16.mxu0 %v4292_v16 }
 0x335   :  { %1270 = vmatpush1.bf16.msra.mxu0 %v4067_v63 }
 0x336   :  { %1271 = vmatprep.subr.bf16.mxu0 %v4292_v16 }
 0x339   :  { %1272 = vmatpush1.bf16.msra.mxu0 %v4068_v12 }
 0x33a   :  { %1273 = vmatprep.subr.bf16.mxu0 %v4292_v16 }
 0x33d   :  { %1274 = vmatpush1.bf16.msra.mxu0 %v4069_v0 }
 0x33e   :  { %1275 = vmatprep.subr.bf16.mxu0 %v4292_v16 }
 0x341   :  { %1276 = vmatpush1.bf16.msra.mxu0 %v4070_v1 }
 0x342   :  { %1285 = vmatprep.subr.bf16.mxu0 %v4292_v16 }
 0x345   :  { %1286 = vmatpush2.bf16.msra.mxu0 %v1177_v3 }
 0x346   :  { %1287 = vmatprep.subr.bf16.mxu0 %v4292_v16 }
 0x349   :  { %1288 = vmatpush2.bf16.msra.mxu0 %v4072_v4 }
 0x34a   :  { %1289 = vmatprep.subr.bf16.mxu0 %v4292_v16 }
 0x34d   :  { %1290 = vmatpush2.bf16.msra.mxu0 %v4073_v7 }
 0x34e   :  { %1291 = vmatprep.subr.bf16.mxu0 %v4292_v16 }
 0x351   :  { %1292 = vmatpush2.bf16.msra.mxu0 %v4074_v14 }
 0x354   :  { %1294 = vmatmul.mubr.bf16.vlgmr.msra.gmra.mxu0 %v819_v19 }
 0x35e   :  { %v3838_v20 = vpop.f32.mrf.mxu1 }
 0x360   :  { %v3839_v21 = vpop.f32.mrf.mxu1 }
 0x361   :  { %v4838_v22 = vadd.f32 %v3839_v21, %v3838_v20 }
 0x362   :  { %v3841_v23 = vpop.f32.mrf.mxu1 }
 0x364   :  { %v3842_v25 = vpop.f32.mrf.mxu1 }
 0x365   :  { %v4840_v26 = vadd.f32 %v3842_v25, %v3841_v23 }
 0x366   :  { %v1389_v27 = vpop.f32.mrf.mxu1 }
 0x367   :  { %v1554_v29 = vmul.f32 %v1389_v27, %v4439_v18 }
 0x368   :  { %v1391_v28 = vpop.f32.mrf.mxu1 }
 0x369   :  { %v1555_v13 = vmul.f32 %v1391_v28, %v4439_v18  ;;  %v1560_v32 = vadd.f32 %v1554_v29, %v4442_v24 }
 0x36a   :  { %v1395_v8 = vpop.f32.mrf.mxu1 }
 0x36b   :  { %v1566_v30 = vmul.f32 %v1395_v8, %v4439_v18  ;;  %v1561_v36 = vadd.f32 %v1555_v13, %v4442_v24 }
 0x36c   :  { %v1397_v31 = vpop.f32.mrf.mxu1 }
 0x36d   :  { %v1572_v33 = vadd.f32 %v1566_v30, %v4442_v24  ;;  %v1567_v34 = vmul.f32 %v1397_v31, %v4439_v18 }
 0x36e   :  { %v1466_v35 = vpop.f32.mrf.mxu1 }
 0x36f   :  { %v1573_v37 = vadd.f32 %v1567_v34, %v4442_v24  ;;  %v1578_v38 = vmax.f32 %v1560_v32, %v1572_v33  ;;  %v1556_v43 = vmul.f32 %v1466_v35, %v4439_v18 }
 0x370   :  { %v1468_v41 = vpop.f32.mrf.mxu1 }
 0x371   :  { %v1584_v45 = vmax.f32 %v1578_v38, 0.0  ;;  %v1579_v47 = vmax.f32 %v1561_v36, %v1573_v37  ;;  %v1557_v49 = vmul.f32 %v1468_v41, %v4439_v18  ;;  %v1562_v54 = vadd.f32 %v1556_v43, %v4442_v24 }
 0x372   :  { %v1472_v48 = vpop.f32.mrf.mxu1 }
 0x373   :  { %v1568_v50 = vmul.f32 %v1472_v48, %v4439_v18  ;;  %1596 = vrot.lane.b32.xlu1 %v1584_v45, %s4295_s24  ;;  %1625 = vrot.lane.b32.xlu0 %v1584_v45, %s4294_s23  ;;  %v1585_v51 = vmax.f32 %v1579_v47, 0.0  ;;  %v1563_v58 = vadd.f32 %v1557_v49, %v4442_v24 }
 0x374   :  { %v1474_v53 = vpop.f32.mrf.mxu1 }
 0x375   :  { %v1574_v55 = vadd.f32 %v1568_v50, %v4442_v24  ;;  %v1569_v56 = vmul.f32 %v1474_v53, %v4439_v18 }
 0x376   :  { %v1543_v57 = vpop.f32.mrf.mxu1 }
 0x377   :  { %v1575_v59 = vadd.f32 %v1569_v56, %v4442_v24  ;;  %1627 = vrot.lane.b32.xlu1 %v1585_v51, %s4294_s23  ;;  %v1580_v60 = vmax.f32 %v1562_v54, %v1574_v55  ;;  %v1558_v62 = vmul.f32 %v1543_v57, %v4439_v18 }
 0x378   :  { %v1545_v61 = vpop.f32.mrf.mxu1 }
 0x379   :  { %v1586_v63 = vmax.f32 %v1580_v60, 0.0  ;;  %v1581_v12 = vmax.f32 %v1563_v58, %v1575_v59  ;;  %v1559_v1 = vmul.f32 %v1545_v61, %v4439_v18  ;;  %v1564_v5 = vadd.f32 %v1558_v62, %v4442_v24 }
 0x37a   :  { %v1549_v0 = vpop.f32.mrf.mxu1 }
 0x37b   :  { %v1570_v2 = vmul.f32 %v1549_v0, %v4439_v18  ;;  %1600 = vrot.lane.b32.xlu1 %v1586_v63, %s4295_s24  ;;  %1629 = vrot.lane.b32.xlu0 %v1586_v63, %s4294_s23  ;;  %v1587_v3 = vmax.f32 %v1581_v12, 0.0  ;;  %v1565_v10 = vadd.f32 %v1559_v1, %v4442_v24 }
 0x37c   :  { %v1551_v4 = vpop.f32.mrf.mxu1 }
 0x37d   :  { %v1576_v6 = vadd.f32 %v1570_v2, %v4442_v24  ;;  %v1571_v7 = vmul.f32 %v1551_v4, %v4439_v18 }
 0x37f   :  { %v1577_v11 = vadd.f32 %v1571_v7, %v4442_v24  ;;  %1598 = vrot.lane.b32.xlu0 %v1585_v51, %s4295_s24  ;;  %v1582_v14 = vmax.f32 %v1564_v5, %v1576_v6 }
 0x381   :  { %v1588_v15 = vmax.f32 %v1582_v14, 0.0  ;;  %v1583_v17 = vmax.f32 %v1565_v10, %v1577_v11 }
 0x383   :  { %1631 = vrot.lane.b32.xlu0 %v1587_v3, %s4294_s23  ;;  %1633 = vrot.lane.b32.xlu1 %v1588_v15, %s4294_s23  ;;  %v1589_v19 = vmax.f32 %v1583_v17, 0.0 }
 0x385   :  { %1659 = vst.msk [vmem:[#allocation2 + $0x88] sm:$0xff] %vm414_vm2, %v1589_v19 }
 0x387   :  { %1602 = vrot.lane.b32.xlu0 %v1587_v3, %s4295_s24  ;;  %1604 = vrot.lane.b32.xlu1 %v1588_v15, %s4295_s24 }
 0x38b   :  { %1722 = vrot.lane.b32.xlu0 %v1585_v51, %s4296_s25  ;;  %1724 = vrot.lane.b32.xlu1 %v1586_v63, %s4296_s25 }
 0x38c   :  { %v1677_v56 = vld [vmem:[#allocation2 + $0x88] sm:$0xff] }
 0x38f   :  { %1720 = vrot.lane.b32.xlu0 %v1584_v45, %s4296_s25  ;;  %1726 = vrot.lane.b32.xlu1 %v1587_v3, %s4296_s25 }
 0x3e4   :  { %v3816_v18 = vpop.f32.mrf.mxu0 }
 0x3e5   :  { %v1597_v24 = vpop.permute.xlu1 %1596  ;;  %v1626_v20 = vpop.permute.xlu0 %1625 }
 0x3e6   :  { %1619 = vst.msk [vmem:[#allocation2] sm:$0xff] %vm369_vm8, %v1597_v24  ;;  %v3817_v21 = vpop.f32.mrf.mxu0 }
 0x3e7   :  { %1648 = vst.msk [vmem:[#allocation2 + $0x30] sm:$0xff] %vm401_vm9, %v1626_v20  ;;  %v3818_v23 = vadd.f32 %v3817_v21, %v3816_v18 }
 0x3e8   :  { %v3819_v25 = vpop.f32.mrf.mxu0 }
 0x3e9   :  { %v1628_v27 = vpop.permute.xlu1 %1627  ;;  %v1255_v28 = vadd.f32 %v4838_v22, %v3818_v23 }
 0x3ea   :  { %v1637_v29 = vsel %vm389_vm4, %v1626_v20, %v1628_v27  ;;  %v3820_v8 = vpop.f32.mrf.mxu0 }
 0x3eb   :  { %v3821_v13 = vadd.f32 %v3820_v8, %v3819_v25 }
 0x3ed   :  { %v1630_v30 = vpop.permute.xlu0 %1629  ;;  %v1660_v31 = vld [vmem:[#allocation2] sm:$0xff]  ;;  %v1258_v33 = vadd.f32 %v4840_v26, %v3821_v13  ;;  %v1601_v35 = vpop.permute.xlu1 %1600 }
 0x3ee   :  { %v1666_v32 = vld [vmem:[#allocation2 + $0x30] sm:$0xff]  ;;  %v1638_v34 = vsel %vm389_vm4, %v1628_v27, %v1630_v30  ;;  %1696 = vrot.lane.b32.xlu0 %v1660_v31, %s4296_s25  ;;  %v4075_v31 = vld [vmem:[%s5364_s3 + $0x78] sm:$0xff]  }
 0x3ef   :  { %1708 = vrot.lane.b32.xlu1 %v1666_v32, %s4296_s25  ;;  %v4076_v32 = vld [vmem:[%s5364_s3 + $0x38] sm:$0xff]   ;;  %3844 = vmatprep.subr.bf16.mxu0 %v4075_v31 }
 0x3f0   :  { %3845 = vmatpush3.bf16.msra.mxu0 %v4076_v32 }
 0x3f1   :  { %v1599_v36 = vpop.permute.xlu0 %1598 }
 0x3f2   :  { %v1608_v37 = vsel %vm357_vm3, %v1597_v24, %v1599_v36  ;;  %v1609_v22 = vsel %vm357_vm3, %v1599_v36, %v1601_v35  ;;  %v4079_v36 = vld [vmem:[%s5364_s3 + $0x68] sm:$0xff]  }
 0x3f3   :  { %1710 = vrot.lane.b32.xlu1 %v1637_v29, %s4296_s25  ;;  %1698 = vrot.lane.b32.xlu0 %v1608_v37, %s4296_s25 }
 0x3f5   :  { %v1632_v38 = vpop.permute.xlu0 %1631  ;;  %v4893_v41 = vpop.permute.xlu1 %1633 }
 0x3f6   :  { %v1639_v26 = vsel %vm389_vm4, %v1630_v30, %v1632_v38  ;;  %v1640_v43 = vsel %vm389_vm4, %v1632_v38, %v4893_v41  ;;  %v4083_v38 = vld [vmem:[%s5364_s3 + $0x60] sm:$0xff]  }
 0x3f7   :  { %1700 = vrot.lane.b32.xlu1 %v1609_v22, %s4296_s25  ;;  %1712 = vrot.lane.b32.xlu0 %v1638_v34, %s4296_s25  ;;  %v4077_v34 = vld [vmem:[%s5364_s3 + $0x70] sm:$0xff]   ;;  %v4080_v22 = vld [vmem:[%s5364_s3 + $0x28] sm:$0xff]  }
 0x3f8   :  { %3846 = vmatprep.subr.bf16.mxu0 %v4077_v34 }
 0x3f9   :  { %v1603_v45 = vpop.permute.xlu0 %1602  ;;  %v4900_v47 = vpop.permute.xlu1 %1604 }
 0x3fa   :  { %v1610_v48 = vsel %vm357_vm3, %v1601_v35, %v1603_v45  ;;  %v1611_v49 = vsel %vm357_vm3, %v1603_v45, %v4900_v47  ;;  %v4078_v35 = vld [vmem:[%s5364_s3 + $0x30] sm:$0xff]  }
 0x3fb   :  { %1714 = vrot.lane.b32.xlu1 %v1639_v26, %s4296_s25  ;;  %1728 = vrot.lane.b32.xlu0 %v1588_v15, %s4296_s25  ;;  %v4087_v26 = vld [vmem:[%s5364_s3 + $0x58] sm:$0xff]   ;;  %v4091_v45 = vld [vmem:[%s5364_s3 + $0x50] sm:$0xff]  }
 0x3fc   :  { %3847 = vmatpush3.bf16.msra.mxu0 %v4078_v35 }
 0x3fd   :  { %v1723_v50 = vpop.permute.xlu0 %1722  ;;  %v1725_v51 = vpop.permute.xlu1 %1724  ;;  %3848 = vmatprep.subr.bf16.mxu0 %v4079_v36 }
 0x3fe   :  { %v1743_v53 = vsel %vm492_vm6, %v1723_v50, %v1725_v51 }
 0x3ff   :  { %1702 = vrot.lane.b32.xlu1 %v1610_v48, %s4296_s25  ;;  %1791 = vmatprep.subr.mxu1 %v1743_v53  ;;  %v4095_v48 = vld [vmem:[%s5364_s3 + $0x48] sm:$0xff]  }
 0x400   :  { %1716 = vrot.lane.b32.xlu0 %v1640_v43, %s4296_s25  ;;  %3849 = vmatpush3.bf16.msra.mxu0 %v4080_v22  ;;  %v4088_v43 = vld [vmem:[%s5364_s3 + $0x18] sm:$0xff]  }
 0x401   :  { %v1721_v54 = vpop.permute.xlu0 %1720  ;;  %v1727_v63 = vpop.permute.xlu1 %1726  ;;  %3850 = vmatprep.subr.bf16.mxu0 %v4083_v38 }
 0x402   :  { %v1742_v55 = vsel %vm492_vm6, %v1721_v54, %v1723_v50  ;;  %v1744_v17 = vsel %vm492_vm6, %v1725_v51, %v1727_v63  ;;  %v4099_v50 = vld [vmem:[%s5364_s3 + $0x40] sm:$0xff]  }
 0x403   :  { %1635 = vrot.lane.b32.xlu1 %v1589_v19, %s4294_s23  ;;  %1792 = vmatpush1.msra.mxu1 %v1742_v55  ;;  %v4100_v51 = vld [vmem:[%s5364_s3] sm:$0xff]   ;;  %v4081_v55 = vld [vmem:[%s5364_s3 + $0xf8] sm:$0xff]  }
 0x404   :  { %1704 = vrot.lane.b32.xlu0 %v1611_v49, %s4296_s25  ;;  %v4096_v49 = vld [vmem:[%s5364_s3 + $0x8] sm:$0xff]  }
 0x407   :  { %1730 = vrot.lane.b32.xlu1 %v1677_v56, %s4296_s25 }
 0x408   :  { %1606 = vrot.lane.b32.xlu0 %v1589_v19, %s4295_s24  ;;  %s4301_s24 = smov 32  }
 0x414   :  { %v1295_v57 = vpop.f32.mrf.mxu0 }
 0x415   :  { %v4915_v58 = vadd.f32 %v1295_v57, %v1255_v28  ;;  %v4082_v57 = vld [vmem:[%s5364_s3 + $0xb8] sm:$0xff]  }
 0x416   :  { %v1297_v59 = vpop.f32.mrf.mxu0 }
 0x418   :  { %v1298_v60 = vpop.f32.mrf.mxu0 }
 0x419   :  { %v4917_v61 = vadd.f32 %v1298_v60, %v1258_v33  ;;  %v4085_v60 = vld [vmem:[%s5364_s3 + $0xf0] sm:$0xff]  }
 0x41a   :  { %v1300_v62 = vpop.f32.mrf.mxu0 }
 0x41b   :  { %v4086_v62 = vld [vmem:[%s5364_s3 + $0xb0] sm:$0xff]  }
 0x460   :  { %v1697_v12 = vpop.permute.xlu0 %1696 }
 0x461   :  { %v1709_v0 = vpop.permute.xlu1 %1708 }
 0x465   :  { %v1711_v1 = vpop.permute.xlu1 %1710  ;;  %v1699_v2 = vpop.permute.xlu0 %1698 }
 0x466   :  { %v1737_v6 = vsel %vm492_vm6, %v1709_v0, %v1711_v1  ;;  %v1732_v11 = vsel %vm492_vm6, %v1697_v12, %v1699_v2  ;;  %v4093_v12 = vld [vmem:[%s5364_s3 + $0xe0] sm:$0xff]  }
 0x467   :  { %v4094_v0 = vld [vmem:[%s5364_s3 + $0xa0] sm:$0xff]  }
 0x469   :  { %v1701_v3 = vpop.permute.xlu1 %1700  ;;  %v1713_v4 = vpop.permute.xlu0 %1712 }
 0x46a   :  { %v1738_v5 = vsel %vm492_vm6, %v1711_v1, %v1713_v4  ;;  %v1733_v10 = vsel %vm492_vm6, %v1699_v2, %v1701_v3  ;;  %v4098_v1 = vld [vmem:[%s5364_s3 + $0x98] sm:$0xff]   ;;  %v4101_v2 = vld [vmem:[%s5364_s3 + $0xd0] sm:$0xff]  }
 0x46b   :  { %1793 = vmatprep.subr.mxu1 %v1738_v5  ;;  %v4104_v5 = vld [vmem:[%s5364_s3 + $0x88] sm:$0xff]  }
 0x46c   :  { %1794 = vmatpush1.msra.mxu1 %v1737_v6  ;;  %v4105_v6 = vld [vmem:[%s5364_s3 + $0xc0] sm:$0xff]  }
 0x46d   :  { %v1715_v7 = vpop.permute.xlu1 %1714  ;;  %1795 = vmatprep.subr.mxu1 %v1733_v10  ;;  %v1729_v14 = vpop.permute.xlu0 %1728 }
 0x46e   :  { %1796 = vmatpush1.msra.mxu1 %v1732_v11  ;;  %v1745_v15 = vsel %vm492_vm6, %v1727_v63, %v1729_v14  ;;  %v1739_v20 = vsel %vm492_vm6, %v1713_v4, %v1715_v7  ;;  %v4089_v63 = vld [vmem:[%s5364_s3 + $0xe8] sm:$0xff]  }
 0x46f   :  { %3712 = vmatmul.mubr.msk.f32.vlgmr.msra.gmra.mxu1 %vm526_vm7, %v4549_v40  ;;  %1868 = vmatprep.subr.mxu1 %v1745_v15  ;;  %v4103_v4 = vld [vmem:[%s5364_s3 + $0xc8] sm:$0xff]  }
 0x470   :  { %1869 = vmatpush1.msra.mxu1 %v1744_v17  ;;  %1835 = vmatprep.mubr.f32.mxu1 %v4291_v9 }
 0x471   :  { %v1703_v19 = vpop.permute.xlu1 %1702 }
 0x472   :  { %v4928_v18 = vpop.permute.xlu0 %1716  ;;  %v1734_v28 = vsel %vm492_vm6, %v1701_v3, %v1703_v19  ;;  %v4102_v3 = vld [vmem:[%s5364_s3 + $0x90] sm:$0xff]  }
 0x473   :  { %v1740_v24 = vsel %vm492_vm6, %v1715_v7, %v4928_v18  ;;  %3713 = vmatmul.mubr.msk.f32.gmra.mxu1 %vm526_vm7, %v4547_v39  ;;  %v4106_v7 = vld [vmem:[%s5364_s3 + $0x80] sm:$0xff]  }
 0x474   :  { %1870 = vmatprep.subr.mxu1 %v1740_v24  ;;  %1906 = vmatprep.mubr.f32.mxu1 %v4291_v9 }
 0x475   :  { %v1636_v21 = vpop.permute.xlu1 %1635  ;;  %1871 = vmatpush1.msra.mxu1 %v1739_v20 }
 0x476   :  { %v1641_v23 = vsel %vm389_vm4, %v4893_v41, %v1636_v21  ;;  %v1705_v25 = vpop.permute.xlu0 %1704  ;;  %v4084_v41 = vld [vmem:[%s5364_s3 + $0x20] sm:$0xff]  }
 0x477   :  { %1653 = vst.msk [vmem:[#allocation2 + $0x58] sm:$0xff] %vm407_vm11, %v1641_v23  ;;  %v1735_v27 = vsel %vm492_vm6, %v1703_v19, %v1705_v25  ;;  %3851 = vmatpush3.bf16.msra.mxu0 %v4084_v41 }
 0x478   :  { %1872 = vmatprep.subr.mxu1 %v1735_v27  ;;  %3852 = vmatprep.subr.bf16.mxu0 %v4087_v26 }
 0x479   :  { %v1731_v29 = vpop.permute.xlu1 %1730  ;;  %1873 = vmatpush1.msra.mxu1 %v1734_v28 }
 0x47a   :  { %v1746_v8 = vsel %vm492_vm6, %v1729_v14, %v1731_v29  ;;  %3714 = vmatmul.mubr.msk.f32.vlgmr.msra.gmra.mxu1 %vm526_vm7, %v4549_v40  ;;  %v1607_v13 = vpop.permute.xlu0 %1606  ;;  %1945 = vmatprep.subr.mxu1 %v1731_v29 }
 0x47b   :  { %v1612_v30 = vsel %vm357_vm3, %v4900_v47, %v1607_v13  ;;  %1946 = vmatpush1.msra.mxu1 %v1746_v8  ;;  %1912 = vmatprep.mubr.f32.mxu1 %v4291_v9  ;;  %v4092_v47 = vld [vmem:[%s5364_s3 + $0x10] sm:$0xff]  }
 0x47c   :  { %1624 = vst.msk [vmem:[#allocation2 + $0x28] sm:$0xff] %vm375_vm10, %v1612_v30  ;;  %3853 = vmatpush3.bf16.msra.mxu0 %v4088_v43  ;;  %v4110_v43 = vld [vmem:[%s5364_s3 + $0x130] sm:$0xff]  }
 0x47d   :  { %3854 = vmatprep.subr.bf16.mxu0 %v4091_v45 }
 0x47e   :  { %v1671_v33 = vld [vmem:[#allocation2 + $0x58] sm:$0xff]  ;;  %3715 = vmatmul.mubr.msk.f32.gmra.mxu1 %vm526_vm7, %v4547_v39 }
 0x47f   :  { %1718 = vrot.lane.b32.xlu0 %v1671_v33, %s4296_s25  ;;  %1983 = vmatprep.mubr.f32.mxu1 %v4291_v9  ;;  %v4109_v33 = vld [vmem:[%s5364_s3 + $0x138] sm:$0xff]  }
 0x480   :  { %3855 = vmatpush3.bf16.msra.mxu0 %v4092_v47 }
 0x481   :  { %3856 = vmatprep.subr.bf16.mxu0 %v4095_v48 }
 0x483   :  { %v1665_v37 = vld [vmem:[#allocation2 + $0x28] sm:$0xff] }
 0x484   :  { %1706 = vrot.lane.b32.xlu1 %v1665_v37, %s4296_s25  ;;  %3857 = vmatpush3.bf16.msra.mxu0 %v4096_v49 }
 0x485   :  { %3858 = vmatprep.subr.bf16.mxu0 %v4099_v50 }
 0x488   :  { %3859 = vmatpush3.bf16.msra.mxu0 %v4100_v51  ;;  %v4111_v51 = vld [vmem:[%s5364_s3 + $0x128] sm:$0xff]  }
 0x489   :  { %2477 = vmatprep.subr.bf16.mxu0 %v4292_v16 }
 0x4f1   :  { %v1719_v53 = vpop.permute.xlu0 %1718 }
 0x4f2   :  { %v1741_v54 = vsel %vm492_vm6, %v4928_v18, %v1719_v53  ;;  %1947 = vmatprep.subr.mxu1 %v1719_v53 }
 0x4f3   :  { %1948 = vmatpush1.msra.mxu1 %v1741_v54 }
 0x4f6   :  { %v1707_v56 = vpop.permute.xlu1 %1706 }
 0x4f7   :  { %v1736_v59 = vsel %vm492_vm6, %v1705_v25, %v1707_v56  ;;  %1949 = vmatprep.subr.mxu1 %v1707_v56 }
 0x4f8   :  { %1950 = vmatpush1.msra.mxu1 %v1736_v59  ;;  %v4108_v59 = vld [vmem:[%s5365_s4] sm:$0xff]  }
 0x4f9   :  { %3716 = vmatmul.mubr.msk.f32.vlgmr.msra.gmra.mxu1 %vm526_vm7, %v4549_v40  ;;  %3866 = vmatprep.subr.bf16.mxu1 %v4081_v55  ;;  %v4090_v40 = vld [vmem:[%s5364_s3 + $0xa8] sm:$0xff]  }
 0x4fa   :  { %1989 = vmatprep.mubr.f32.mxu1 %v4291_v9  ;;  %3867 = vmatpush3.bf16.msra.mxu1 %v4082_v57  ;;  %v4107_v55 = vld [vmem:[%s5365_s4 + $0x8] sm:$0xff]   ;;  %v4112_v57 = vld [vmem:[%s5364_s3 + $0x120] sm:$0xff]  }
 0x4fb   :  { %3868 = vmatprep.subr.bf16.mxu1 %v4085_v60  ;;  %v4113_v60 = vld [vmem:[%s5364_s3 + $0x118] sm:$0xff]  }
 0x4fd   :  { %3717 = vmatmul.mubr.msk.f32.gmra.mxu1 %vm526_vm7, %v4547_v39  ;;  %v4097_v39 = vld [vmem:[%s5364_s3 + $0xd8] sm:$0xff]  }
 0x4fe   :  { %3869 = vmatpush3.bf16.msra.mxu1 %v4086_v62  ;;  %v4114_v62 = vld [vmem:[%s5364_s3 + $0x110] sm:$0xff]  }
 0x4ff   :  { %3870 = vmatprep.subr.bf16.mxu1 %v4089_v63  ;;  %v4115_v63 = vld [vmem:[%s5364_s3 + $0x108] sm:$0xff]  }
 0x502   :  { %3871 = vmatpush3.bf16.msra.mxu1 %v4090_v40  ;;  %v4116_v40 = vld [vmem:[%s5364_s3 + $0x100] sm:$0xff]  }
 0x503   :  { %3872 = vmatprep.subr.bf16.mxu1 %v4093_v12  ;;  %v4117_v12 = vld [vmem:[%s5364_s3 + $0x158] sm:$0x3f]  }
 0x506   :  { %3873 = vmatpush3.bf16.msra.mxu1 %v4094_v0  ;;  %v2393_v0 = vsel %vm1175_vm12, %v4117_v12, 0 }
 0x507   :  { %3874 = vmatprep.subr.bf16.mxu1 %v4097_v39  ;;  %v4118_v39 = vld [vmem:[%s5364_s3 + $0x150] sm:$0xff]  }
 0x50a   :  { %3875 = vmatpush3.bf16.msra.mxu1 %v4098_v1  ;;  %v4119_v1 = vld [vmem:[%s5364_s3 + $0x148] sm:$0xff]  }
 0x50b   :  { %3876 = vmatprep.subr.bf16.mxu1 %v4101_v2  ;;  %v4120_v2 = vld [vmem:[%s5364_s3 + $0x140] sm:$0xff]  }
 0x50e   :  { %3877 = vmatpush3.bf16.msra.mxu1 %v4102_v3 }
 0x50f   :  { %3878 = vmatprep.subr.bf16.mxu1 %v4103_v4 }
 0x512   :  { %3879 = vmatpush3.bf16.msra.mxu1 %v4104_v5 }
 0x513   :  { %3880 = vmatprep.subr.bf16.mxu1 %v4105_v6 }
 0x516   :  { %3881 = vmatpush3.bf16.msra.mxu1 %v4106_v7 }
 0x517   :  { %3923 = vmatprep.subr.bf16.mxu1 %v4291_v9 }
 0x52f   :  { %v1831_v10 = vpop.f32.mrf.mxu1 }
 0x530   :  { %v1996_v15 = vmul.f32 %v1831_v10, %v4683_v42 }
 0x531   :  { %v1833_v11 = vpop.f32.mrf.mxu1 }
 0x532   :  { %v1997_v14 = vmul.f32 %v1833_v11, %v4683_v42  ;;  %v2008_v23 = vadd.f32 %v1996_v15, %v4685_v44 }
 0x533   :  { %v1837_v17 = vpop.f32.mrf.mxu1 }
 0x534   :  { %v2002_v19 = vmul.f32 %v1837_v17, %v4687_v46  ;;  %v2009_v24 = vadd.f32 %v1997_v14, %v4685_v44  ;;  %v2020_v13 = vmax.f32 %v2008_v23, 0.0 }
 0x535   :  { %v1839_v18 = vpop.f32.mrf.mxu1 }
 0x536   :  { %v2014_v20 = vadd.f32 %v2002_v19, %v4695_v52  ;;  %v2003_v21 = vmul.f32 %v1839_v18, %v4687_v46  ;;  %v2021_v29 = vmax.f32 %v2009_v24, 0.0 }
 0x538   :  { %v2015_v25 = vadd.f32 %v2003_v21, %v4695_v52  ;;  %v2026_v27 = vmax.f32 %v2014_v20, 0.0 }
 0x53a   :  { %v1908_v28 = vpop.f32.mrf.mxu1  ;;  %v2027_v8 = vmax.f32 %v2015_v25, 0.0  ;;  %v2032_v34 = vpack.c.bf16 %v2026_v27, %v2020_v13 }
 0x53b   :  { %v1998_v35 = vmul.f32 %v1908_v28, %v4683_v42 }
 0x53c   :  { %v1910_v30 = vpop.f32.mrf.mxu1  ;;  %v2033_v32 = vpack.c.bf16 %v2027_v8, %v2021_v29 }
 0x53d   :  { %v1999_v31 = vmul.f32 %v1910_v30, %v4683_v42  ;;  %v2010_v45 = vadd.f32 %v1998_v35, %v4685_v44 }
 0x53e   :  { %v1914_v36 = vpop.f32.mrf.mxu1  ;;  %2427 = vmatprep.mubr.bf16.mxu0 %v2033_v32 }
 0x53f   :  { %v2004_v37 = vmul.f32 %v1914_v36, %v4687_v46  ;;  %2428 = vmatmul.mubr.bf16.vlgmr.msra.gmra.mxu0 %v2032_v34  ;;  %v2011_v38 = vadd.f32 %v1999_v31, %v4685_v44  ;;  %v2022_v53 = vmax.f32 %v2010_v45, 0.0  ;;  %v5152_v31 = vld [vmem:[%s5366_s5] ss:$0 sm:$0xff] }
 0x540   :  { %v1916_v22 = vpop.f32.mrf.mxu1  ;;  %2478 = vmatpush1.bf16.msra.mxu0 %v4109_v33  ;;  %v1306_v36 = vadd.f32 %v5152_v31, %v4915_v58 }
 0x541   :  { %v2016_v41 = vadd.f32 %v2004_v37, %v4695_v52  ;;  %v2005_v26 = vmul.f32 %v1916_v22, %v4687_v46  ;;  %2479 = vmatprep.subr.bf16.mxu0 %v4292_v16  ;;  %v2023_v49 = vmax.f32 %v2011_v38, 0.0 }
 0x543   :  { %v2017_v47 = vadd.f32 %v2005_v26, %v4695_v52  ;;  %v2028_v48 = vmax.f32 %v2016_v41, 0.0  ;;  %v1307_v26 = vadd.f32 %v5152_v31, %v4917_v61 }
 0x544   :  { %2480 = vmatpush1.bf16.msra.mxu0 %v4110_v43 }
 0x545   :  { %v2029_v50 = vmax.f32 %v2017_v47, 0.0  ;;  %2481 = vmatprep.subr.bf16.mxu0 %v4292_v16  ;;  %v2034_v56 = vpack.c.bf16 %v2028_v48, %v2022_v53 }
 0x547   :  { %v2035_v54 = vpack.c.bf16 %v2029_v50, %v2023_v49 }
 0x548   :  { %2482 = vmatpush1.bf16.msra.mxu0 %v4111_v51 }
 0x549   :  { %2468 = vmatprep.mubr.bf16.mxu1 %v2035_v54  ;;  %2483 = vmatprep.subr.bf16.mxu0 %v4292_v16 }
 0x54a   :  { %2469 = vmatmul.mubr.bf16.vlgmr.msra.gmra.mxu1 %v2034_v56 }
 0x54b   :  { %3924 = vmatpush3.bf16.msra.mxu1 %v4107_v55  ;;  %3927 = vmatprep.mubr.msk.bf16.mxu1 %vm4300_vm13, %v4291_v9 }
 0x54c   :  { %3925 = vmatprep.subr.bf16.mxu1 %v4291_v9  ;;  %2484 = vmatpush1.bf16.msra.mxu0 %v4112_v57 }
 0x54d   :  { %2485 = vmatprep.subr.bf16.mxu0 %v4292_v16 }
 0x54f   :  { %3926 = vmatpush3.bf16.msra.mxu1 %v4108_v59 }
 0x550   :  { %3931 = vmatprep.subr.bf16.mxu1 %v4291_v9  ;;  %2486 = vmatpush1.bf16.msra.mxu0 %v4113_v60 }
 0x551   :  { %2487 = vmatprep.subr.bf16.mxu0 %v4292_v16 }
 0x552   :  { %3928 = vmatmul.mubr.bf16.vlgmr.msra.gmra.mxu1 %v4292_v16 }
 0x553   :  { %3932 = vmatpush3.bf16.msra.mxu1 %v4107_v55  ;;  %3935 = vmatprep.mubr.msk.bf16.mxu1 %vm4300_vm13, %v4291_v9 }
 0x554   :  { %3933 = vmatprep.subr.bf16.mxu1 %v4291_v9  ;;  %2488 = vmatpush1.bf16.msra.mxu0 %v4114_v62 }
 0x555   :  { %2489 = vmatprep.subr.bf16.mxu0 %v4292_v16 }
 0x557   :  { %3934 = vmatpush3.bf16.msra.mxu1 %v4108_v59 }
 0x558   :  { %2490 = vmatpush1.bf16.msra.mxu0 %v4115_v63 }
 0x559   :  { %2491 = vmatprep.subr.bf16.mxu0 %v4292_v16 }
 0x55c   :  { %2492 = vmatpush1.bf16.msra.mxu0 %v4116_v40 }
 0x55d   :  { %2501 = vmatprep.subr.bf16.mxu0 %v4292_v16 }
 0x560   :  { %2502 = vmatpush2.bf16.msra.mxu0 %v2393_v0 }
 0x561   :  { %2503 = vmatprep.subr.bf16.mxu0 %v4292_v16 }
 0x564   :  { %2504 = vmatpush2.bf16.msra.mxu0 %v4118_v39 }
 0x565   :  { %2505 = vmatprep.subr.bf16.mxu0 %v4292_v16 }
 0x568   :  { %2506 = vmatpush2.bf16.msra.mxu0 %v4119_v1 }
 0x569   :  { %2507 = vmatprep.subr.bf16.mxu0 %v4292_v16 }
 0x56c   :  { %2508 = vmatpush2.bf16.msra.mxu0 %v4120_v2 }
 0x56d   :  { %3971 = vmatprep.subr.bf16.mxu0 %v4291_v9 }
 0x5b9   :  { %v1985_v3 = vpop.f32.mrf.mxu1 }
 0x5ba   :  { %v2000_v6 = vmul.f32 %v1985_v3, %v4683_v42 }
 0x5bb   :  { %v1987_v4 = vpop.f32.mrf.mxu1 }
 0x5bc   :  { %v2001_v5 = vmul.f32 %v1987_v4, %v4683_v42  ;;  %v2012_v19 = vadd.f32 %v2000_v6, %v4685_v44 }
 0x5bd   :  { %v1991_v7 = vpop.f32.mrf.mxu1 }
 0x5be   :  { %v2006_v10 = vmul.f32 %v1991_v7, %v4687_v46  ;;  %v2013_v14 = vadd.f32 %v2001_v5, %v4685_v44  ;;  %v2024_v23 = vmax.f32 %v2012_v19, 0.0 }
 0x5bf   :  { %v1993_v11 = vpop.f32.mrf.mxu1 }
 0x5c0   :  { %v2018_v15 = vadd.f32 %v2006_v10, %v4695_v52  ;;  %v2007_v17 = vmul.f32 %v1993_v11, %v4687_v46  ;;  %v2025_v20 = vmax.f32 %v2013_v14, 0.0 }
 0x5c2   :  { %v2019_v18 = vadd.f32 %v2007_v17, %v4695_v52  ;;  %v2030_v24 = vmax.f32 %v2018_v15, 0.0 }
 0x5c4   :  { %v2031_v21 = vmax.f32 %v2019_v18, 0.0  ;;  %v2036_v42 = vpack.c.bf16 %v2030_v24, %v2024_v23 }
 0x5c6   :  { %v2037_v25 = vpack.c.bf16 %v2031_v21, %v2025_v20 }
 0x5c8   :  { %3762 = vmatprep.mubr.msk.bf16.mxu0 %vm414_vm2, %v2037_v25 }
 0x5c9   :  { %2510 = vmatmul.mubr.bf16.vlgmr.msra.gmra.mxu0 %v2036_v42 }
 0x5ca   :  { %3975 = vmatprep.mubr.msk.bf16.mxu0 %vm4300_vm13, %v4291_v9 }
 0x5ff   :  { %v3860_v27 = vpop.f32.mrf.mxu0 }
 0x601   :  { %v3861_v28 = vpop.f32.mrf.mxu0 }
 0x602   :  { %v3862_v29 = vadd.f32 %v3861_v28, %v3860_v27 }
 0x603   :  { %v3863_v46 = vpop.f32.mrf.mxu0 }
 0x605   :  { %v3864_v52 = vpop.f32.mrf.mxu0 }
 0x606   :  { %v3865_v34 = vadd.f32 %v3864_v52, %v3863_v46 }
 0x60a   :  { %v3882_v8 = vpop.f32.mrf.mxu1 }
 0x60c   :  { %v3883_v44 = vpop.f32.mrf.mxu1 }
 0x60d   :  { %v3884_v13 = vadd.f32 %v3883_v44, %v3882_v8 }
 0x60e   :  { %v3885_v30 = vpop.f32.mrf.mxu1 }
 0x60f   :  { %v2471_v32 = vadd.f32 %v3884_v13, %v3862_v29 }
 0x610   :  { %v3886_v33 = vpop.f32.mrf.mxu1 }
 0x611   :  { %v3887_v35 = vadd.f32 %v3886_v33, %v3885_v30 }
 0x612   :  { %v2596_v37 = vpop.f32.mrf.mxu1 }
 0x613   :  { %v2603_v22 = vadd.f32 %v2596_v37, %v1306_v36  ;;  %v2474_v38 = vadd.f32 %v3887_v35, %v3865_v34 }
 0x614   :  { %v3929_v41 = vpop.f32.mrf.mxu1 }
 0x615   :  { %4129 = vtanh.f32 %v2603_v22  ;;  %v3765_v58 = vmul.f32 -1.442695, %v2603_v22 }
 0x616   :  { %v2599_v43 = vpop.f32.mrf.mxu1 }
 0x617   :  { %v2604_v45 = vadd.f32 %v2599_v43, %v1307_v26 }
 0x618   :  { %v3930_v47 = vpop.f32.mrf.mxu1 }
 0x619   :  { %4131 = vtanh.f32 %v2604_v45  ;;  %v3766_v50 = vmul.f32 -1.442695, %v2604_v45 }
 0x61a   :  { %4133 = vpow2.f32 %v3765_v58  ;;  %v4121_v58 = vld [vmem:[%s5365_s4 + $0x38] sm:$0xff]  }
 0x61b   :  { %4135 = vpow2.f32 %v3766_v50  ;;  %v4122_v50 = vld [vmem:[%s5365_s4 + $0x30] sm:$0xff]   ;;  %3939 = vmatprep.subr.bf16.mxu1 %v4121_v58 }
 0x622   :  { %v4130_v48 = vpop.eup %4129 }
 0x623   :  { %2623 = vrot.lane.b32.xlu0 %v4130_v48, %s4301_s24 }
 0x626   :  { %v4132_v49 = vpop.eup %4131 }
 0x627   :  { %2625 = vrot.lane.b32.xlu1 %v4132_v49, %s4301_s24  ;;  %v4134_v51 = vpop.eup %4133 }
 0x628   :  { %v2611_v53 = vadd.f32 1.0, %v4134_v51  ;;  %v4136_v54 = vpop.eup %4135 }
 0x629   :  { %v2612_v61 = vadd.f32 1.0, %v4136_v54 }
 0x62a   :  { %4137 = vrcp.f32 %v2611_v53 }
 0x62b   :  { %4139 = vrcp.f32 %v2612_v61 }
 0x637   :  { %v4138_v63 = vpop.eup %4137 }
 0x638   :  { %v4140_v0 = vpop.eup %4139  ;;  %v2619_v2 = vmul.f32 0.0, %v4138_v63 }
 0x639   :  { %v2620_v5 = vmul.f32 0.0, %v4140_v0 }
 0x689   :  { %v2511_v55 = vpop.f32.mrf.mxu0 }
 0x68a   :  { %v2512_v56 = vadd.f32 %v2511_v55, %v2471_v32 }
 0x68b   :  { %v2513_v57 = vpop.f32.mrf.mxu0 }
 0x68c   :  { %v2518_v20 = vadd.f32 %v5152_v31, %v2512_v56 }
 0x68d   :  { %v2514_v59 = vpop.f32.mrf.mxu0 }
 0x68e   :  { %v2515_v60 = vadd.f32 %v2514_v59, %v2474_v38 }
 0x68f   :  { %v2516_v62 = vpop.f32.mrf.mxu0 }
 0x690   :  { %v2519_v42 = vadd.f32 %v5152_v31, %v2515_v60 }
 0x695   :  { %v2624_v40 = vpop.permute.xlu0 %2623 }
 0x696   :  { %v2629_v12 = vmul.f32 %v4138_v63, %v2624_v40 }
 0x698   :  { %2633 = vrot.lane.b32.xlu0 %v2629_v12, %s4301_s24 }
 0x699   :  { %v2626_v39 = vpop.permute.xlu1 %2625 }
 0x69a   :  { %v2630_v1 = vmul.f32 %v4140_v0, %v2626_v39 }
 0x69c   :  { %2635 = vrot.lane.b32.xlu1 %v2630_v1, %s4301_s24  ;;  %v4124_v1 = vld [vmem:[%s5365_s4 + $0x10] sm:$0xff]  }
 0x70a   :  { %v2634_v3 = vpop.permute.xlu0 %2633 }
 0x70b   :  { %v2639_v4 = vadd.f32 %v2634_v3, %v2619_v2  ;;  %v3774_v2 = vld [vmem:[%s5366_s5 + $0x1] ss:$0 sm:$0xff] }
 0x70d   :  { %4141 = vtanh.f32 %v2639_v4 }
 0x70e   :  { %v2636_v6 = vpop.permute.xlu1 %2635 }
 0x70f   :  { %v2640_v7 = vadd.f32 %v2636_v6, %v2620_v5 }
 0x711   :  { %4143 = vtanh.f32 %v2640_v7 }
 0x71a   :  { %v4142_v10 = vpop.eup %4141 }
 0x71b   :  { %2645 = vrot.lane.b32.xlu0 %v4142_v10, %s4301_s24 }
 0x71e   :  { %v4144_v11 = vpop.eup %4143 }
 0x71f   :  { %2647 = vrot.lane.b32.xlu1 %v4144_v11, %s4301_s24 }
 0x78d   :  { %v2646_v14 = vpop.permute.xlu0 %2645 }
 0x78e   :  { %v2651_v17 = vmul.f32 %v4138_v63, %v2646_v14 }
 0x791   :  { %v2648_v15 = vpop.permute.xlu1 %2647 }
 0x792   :  { %v2652_v19 = vmul.f32 %v4140_v0, %v2648_v15  ;;  %v4123_v0 = vld [vmem:[%s5365_s4 + $0x18] sm:$0xff]  }
 0x794   :  { %v2653_v18 = vpack.c.bf16 %v2652_v19, %v2651_v17 }
 0x796   :  { %2655 = vrot.lane.b32.xlu0 %v2653_v18, %s4302_s2 }
 0x808   :  { %v2656_v24 = vpop.permute.xlu0 %2655 }
 0x809   :  { %3936 = vmatmul.mubr.msk.bf16.vlgmr.msra.gmra.mxu1 %vm2558_vm14, %v2656_v24 }
 0x80a   :  { %3940 = vmatpush3.bf16.msra.mxu1 %v4121_v58 }
 0x80b   :  { %3941 = vmatprep.subr.bf16.mxu1 %v4122_v50 }
 0x80e   :  { %3942 = vmatpush3.bf16.msra.mxu1 %v4122_v50 }
 0x80f   :  { %3947 = vmatprep.subr.bf16.mxu1 %v4291_v9 }
 0x8c9   :  { %v2694_v21 = vpop.f32.mrf.mxu1 }
 0x8ca   :  { %v2701_v23 = vadd.f32 %v2694_v21, %v2518_v20 }
 0x8cb   :  { %v3937_v25 = vpop.f32.mrf.mxu1 }
 0x8cc   :  { %4145 = vtanh.f32 %v2701_v23  ;;  %v3768_v44 = vmul.f32 -1.442695, %v2701_v23 }
 0x8cd   :  { %v2697_v27 = vpop.f32.mrf.mxu1 }
 0x8ce   :  { %v2702_v28 = vadd.f32 %v2697_v27, %v2519_v42 }
 0x8cf   :  { %v3938_v29 = vpop.f32.mrf.mxu1 }
 0x8d0   :  { %4147 = vtanh.f32 %v2702_v28  ;;  %v3769_v13 = vmul.f32 -1.442695, %v2702_v28 }
 0x8d1   :  { %4149 = vpow2.f32 %v3768_v44 }
 0x8d2   :  { %4151 = vpow2.f32 %v3769_v13 }
 0x8d9   :  { %v4146_v46 = vpop.eup %4145 }
 0x8da   :  { %2721 = vrot.lane.b32.xlu1 %v4146_v46, %s4301_s24 }
 0x8dd   :  { %v4148_v8 = vpop.eup %4147 }
 0x8de   :  { %2723 = vrot.lane.b32.xlu0 %v4148_v8, %s4301_s24  ;;  %v4150_v52 = vpop.eup %4149 }
 0x8df   :  { %v2709_v30 = vadd.f32 1.0, %v4150_v52  ;;  %v4152_v32 = vpop.eup %4151 }
 0x8e0   :  { %v2710_v33 = vadd.f32 1.0, %v4152_v32 }
 0x8e1   :  { %4153 = vrcp.f32 %v2709_v30 }
 0x8e2   :  { %4155 = vrcp.f32 %v2710_v33 }
 0x8ee   :  { %v4154_v31 = vpop.eup %4153 }
 0x8ef   :  { %v4156_v36 = vpop.eup %4155  ;;  %v2717_v38 = vmul.f32 %v4154_v31, %v2639_v4 }
 0x8f0   :  { %v2718_v43 = vmul.f32 %v4156_v36, %v2640_v7 }
 0x94c   :  { %v2722_v34 = vpop.permute.xlu1 %2721 }
 0x94d   :  { %v2727_v35 = vmul.f32 %v4154_v31, %v2722_v34 }
 0x94f   :  { %2731 = vrot.lane.b32.xlu1 %v2727_v35, %s4301_s24 }
 0x950   :  { %v2724_v37 = vpop.permute.xlu0 %2723 }
 0x951   :  { %v2728_v22 = vmul.f32 %v4156_v36, %v2724_v37 }
 0x953   :  { %2733 = vrot.lane.b32.xlu0 %v2728_v22, %s4301_s24 }
 0x9c1   :  { %v2732_v41 = vpop.permute.xlu1 %2731 }
 0x9c2   :  { %v5172_v26 = vadd.f32 %v2732_v41, %v2717_v38 }
 0x9c4   :  { %4157 = vtanh.f32 %v5172_v26 }
 0x9c5   :  { %v2734_v45 = vpop.permute.xlu0 %2733 }
 0x9c6   :  { %v5175_v47 = vadd.f32 %v2734_v45, %v2718_v43 }
 0x9c8   :  { %4159 = vtanh.f32 %v5175_v47 }
 0x9d1   :  { %v4158_v48 = vpop.eup %4157 }
 0x9d2   :  { %2743 = vrot.lane.b32.xlu1 %v4158_v48, %s4301_s24 }
 0x9d5   :  { %v4160_v49 = vpop.eup %4159 }
 0x9d6   :  { %2773 = vrot.lane.b32.xlu1 %v2651_v17, %s4302_s2  ;;  %2745 = vrot.lane.b32.xlu0 %v4160_v49, %s4301_s24 }
 0x9da   :  { %2775 = vrot.lane.b32.xlu0 %v2652_v19, %s4302_s2 }
 0xa44   :  { %v2744_v51 = vpop.permute.xlu1 %2743 }
 0xa45   :  { %v2749_v53 = vmul.f32 %v4154_v31, %v2744_v51 }
 0xa47   :  { %2753 = vrot.lane.b32.xlu1 %v2749_v53, %s4302_s2 }
 0xa48   :  { %v2774_v54 = vpop.permute.xlu1 %2773  ;;  %v2746_v61 = vpop.permute.xlu0 %2745 }
 0xa49   :  { %2779 = vst.msk [vmem:[#allocation4] sm:$0xff] %vm2558_vm14, %v2774_v54  ;;  %v2750_v55 = vmul.f32 %v4156_v36, %v2746_v61 }
 0xa4b   :  { %2755 = vrot.lane.b32.xlu0 %v2750_v55, %s4302_s2 }
 0xa4c   :  { %v2776_v56 = vpop.permute.xlu0 %2775 }
 0xa4d   :  { %2780 = vst.msk [vmem:[#allocation4 + $0x8] sm:$0xff] %vm2558_vm14, %v2776_v56 }
 0xa50   :  { %v2784_v57 = vld [vmem:[#allocation4] sm:$0xff] }
 0xa54   :  { %v2785_v59 = vld [vmem:[#allocation4 + $0x8] sm:$0xff] }
 0xa55   :  { %v2788_v60 = vpack.c.bf16 %v2785_v59, %v2784_v57 }
 0xa57   :  { %3943 = vmatprep.mubr.msk.bf16.mxu1 %vm2558_vm14, %v2788_v60 }
 0xab9   :  { %v2754_v62 = vpop.permute.xlu1 %2753 }
 0xaba   :  { %2759 = vst.msk [vmem:[#allocation7] sm:$0xff] %vm2558_vm14, %v2754_v62  ;;  %2781 = vst.msk [vmem:[#allocation4 + $0x10] sm:$0xff] %vm2558_vm14, %v2754_v62 }
 0xabd   :  { %v2756_v63 = vpop.permute.xlu0 %2755 }
 0xabe   :  { %2760 = vst.msk [vmem:[#allocation7 + $0x8] sm:$0xff] %vm2558_vm14, %v2756_v63  ;;  %2782 = vst.msk [vmem:[#allocation4 + $0x18] sm:$0xff] %vm2558_vm14, %v2756_v63 }
 0xac1   :  { %v2786_v40 = vld [vmem:[#allocation4 + $0x10] sm:$0xff] }
 0xac5   :  { %v2787_v12 = vld [vmem:[#allocation4 + $0x18] sm:$0xff] }
 0xac6   :  { %v2789_v39 = vpack.c.bf16 %v2787_v12, %v2786_v40 }
 0xac8   :  { %3944 = vmatmul.mubr.msk.bf16.vlgmr.msra.gmra.mxu1 %vm2558_vm14, %v2789_v39 }
 0xac9   :  { %3948 = vmatpush3.bf16.msra.mxu1 %v4123_v0  ;;  %3951 = vmatprep.mubr.msk.bf16.mxu1 %vm4300_vm13, %v4291_v9 }
 0xaca   :  { %3949 = vmatprep.subr.bf16.mxu1 %v4291_v9 }
 0xacd   :  { %3950 = vmatpush3.bf16.msra.mxu1 %v4124_v1 }
 0xace   :  { %3955 = vmatprep.subr.bf16.mxu1 %v4291_v9 }
 0xad0   :  { %3952 = vmatmul.mubr.bf16.vlgmr.msra.gmra.mxu1 %v4292_v16 }
 0xad1   :  { %3956 = vmatpush3.bf16.msra.mxu1 %v4123_v0  ;;  %3959 = vmatprep.mubr.msk.bf16.mxu1 %vm4300_vm13, %v4291_v9 }
 0xad2   :  { %3957 = vmatprep.subr.bf16.mxu1 %v4291_v9 }
 0xad5   :  { %3958 = vmatpush3.bf16.msra.mxu1 %v4124_v1 }
 0xb88   :  { %v3945_v3 = vpop.f32.mrf.mxu1 }
 0xb89   :  { %v2863_v4 = vadd.f32 %v3945_v3, %v3774_v2 }
 0xb8a   :  { %v2842_v5 = vpop.f32.mrf.mxu1 }
 0xb8b   :  { %v2861_v11 = vadd.f32 %v3774_v2, %v2842_v5 }
 0xb8c   :  { %v3946_v6 = vpop.f32.mrf.mxu1 }
 0xb8d   :  { %v2864_v7 = vadd.f32 %v3946_v6, %v3774_v2 }
 0xb8e   :  { %v2845_v10 = vpop.f32.mrf.mxu1 }
 0xb8f   :  { %v2862_v19 = vadd.f32 %v3774_v2, %v2845_v10 }
 0xb90   :  { %v2911_v14 = vpop.f32.mrf.mxu1 }
 0xb91   :  { %v2918_v15 = vadd.f32 %v2911_v14, %v2861_v11 }
 0xb92   :  { %v3953_v17 = vpop.f32.mrf.mxu1 }
 0xb93   :  { %4161 = vtanh.f32 %v2918_v15  ;;  %v3777_v25 = vmul.f32 -1.442695, %v2918_v15 }
 0xb94   :  { %v2914_v18 = vpop.f32.mrf.mxu1 }
 0xb95   :  { %v2919_v24 = vadd.f32 %v2914_v18, %v2862_v19  ;;  %v4125_v19 = vld [vmem:[%s5365_s4 + $0x48] sm:$0xff]  }
 0xb96   :  { %v3954_v20 = vpop.f32.mrf.mxu1  ;;  %v4126_v18 = vld [vmem:[%s5365_s4 + $0x28] sm:$0xff]   ;;  %3963 = vmatprep.subr.bf16.mxu1 %v4125_v19 }
 0xb97   :  { %4163 = vtanh.f32 %v2919_v24  ;;  %v3778_v42 = vmul.f32 -1.442695, %v2919_v24  ;;  %v4127_v24 = vld [vmem:[%s5365_s4 + $0x40] sm:$0xff]   ;;  %3972 = vmatpush3.bf16.msra.mxu0 %v4126_v18 }
 0xb98   :  { %4165 = vpow2.f32 %v3777_v25  ;;  %v4128_v20 = vld [vmem:[%s5365_s4 + $0x20] sm:$0xff]   ;;  %3973 = vmatprep.subr.bf16.mxu0 %v4291_v9 }
 0xb99   :  { %4167 = vpow2.f32 %v3778_v42 }
 0xb9b   :  { %3974 = vmatpush3.bf16.msra.mxu0 %v4128_v20 }
 0xb9c   :  { %3987 = vmatprep.subr.mxu0 %v4291_v9 }
 0xb9e   :  { %3976 = vmatmul.mubr.bf16.vlgmr.msra.gmra.mxu0 %v4292_v16 }
 0xb9f   :  { %3995 = vmatprep.mubr.msk.f32.mxu0 %vm4300_vm13, %v4291_v9 }
 0xba0   :  { %v4162_v21 = vpop.eup %4161 }
 0xba1   :  { %2938 = vrot.lane.b32.xlu1 %v4162_v21, %s4301_s24 }
 0xba4   :  { %v4164_v23 = vpop.eup %4163 }
 0xba5   :  { %2940 = vrot.lane.b32.xlu0 %v4164_v23, %s4301_s24  ;;  %v4166_v27 = vpop.eup %4165 }
 0xba6   :  { %v2926_v28 = vadd.f32 1.0, %v4166_v27  ;;  %v4168_v29 = vpop.eup %4167 }
 0xba7   :  { %v2927_v46 = vadd.f32 1.0, %v4168_v29 }
 0xba8   :  { %4169 = vrcp.f32 %v2926_v28 }
 0xba9   :  { %4171 = vrcp.f32 %v2927_v46 }
 0xbb5   :  { %v4170_v8 = vpop.eup %4169 }
 0xbb6   :  { %v4172_v52 = vpop.eup %4171  ;;  %v2934_v33 = vmul.f32 0.0, %v4170_v8 }
 0xbb7   :  { %v2935_v35 = vmul.f32 0.0, %v4172_v52 }
 0xc13   :  { %v2939_v44 = vpop.permute.xlu1 %2938 }
 0xc14   :  { %v2944_v13 = vmul.f32 %v4170_v8, %v2939_v44 }
 0xc16   :  { %2948 = vrot.lane.b32.xlu1 %v2944_v13, %s4301_s24 }
 0xc17   :  { %v2941_v30 = vpop.permute.xlu0 %2940 }
 0xc18   :  { %v2945_v32 = vmul.f32 %v4172_v52, %v2941_v30 }
 0xc1a   :  { %2950 = vrot.lane.b32.xlu0 %v2945_v32, %s4301_s24 }
 0xc5e   :  { %v3228_v32 = vpop.f32.mrf.mxu0 }
 0xc88   :  { %v2949_v31 = vpop.permute.xlu1 %2948 }
 0xc89   :  { %v2954_v34 = vadd.f32 %v2949_v31, %v2934_v33  ;;  %v3977_v33 = vpop.f32.mrf.mxu0 }
 0xc8a   :  { %v3416_v33 = vld [vmem:[%s5367_s6 + $0x18] sm:$0xff] }
 0xc8b   :  { %4173 = vtanh.f32 %v2954_v34  ;;  %v3231_v31 = vpop.f32.mrf.mxu0  ;;  %3988 = vmatpush3.msra.mxu0 %v3416_v33 }
 0xc8c   :  { %v2951_v36 = vpop.permute.xlu0 %2950  ;;  %3989 = vmatprep.subr.mxu0 %v4291_v9 }
 0xc8d   :  { %v2955_v37 = vadd.f32 %v2951_v36, %v2935_v35  ;;  %v3786_v35 = vld [vmem:[%s5366_s5 + $0x2] ss:$0 sm:$0xff] }
 0xc8f   :  { %4175 = vtanh.f32 %v2955_v37 }
 0xc98   :  { %v4174_v22 = vpop.eup %4173 }
 0xc99   :  { %2960 = vrot.lane.b32.xlu1 %v4174_v22, %s4301_s24 }
 0xc9c   :  { %v4176_v38 = vpop.eup %4175 }
 0xc9d   :  { %2962 = vrot.lane.b32.xlu0 %v4176_v38, %s4301_s24 }
 0xd0b   :  { %v2961_v41 = vpop.permute.xlu1 %2960 }
 0xd0c   :  { %v2966_v45 = vmul.f32 %v4170_v8, %v2961_v41 }
 0xd0f   :  { %v2963_v43 = vpop.permute.xlu0 %2962 }
 0xd10   :  { %v2967_v48 = vmul.f32 %v4172_v52, %v2963_v43 }
 0xd12   :  { %v2968_v49 = vpack.c.bf16 %v2967_v48, %v2966_v45 }
 0xd14   :  { %2970 = vrot.lane.b32.xlu1 %v2968_v49, %s4302_s2 }
 0xd86   :  { %v2971_v58 = vpop.permute.xlu1 %2970 }
 0xd87   :  { %3960 = vmatmul.mubr.msk.bf16.vlgmr.msra.gmra.mxu1 %vm2558_vm14, %v2971_v58 }
 0xd88   :  { %3964 = vmatpush3.bf16.msra.mxu1 %v4125_v19 }
 0xd89   :  { %3965 = vmatprep.subr.bf16.mxu1 %v4127_v24 }
 0xd8c   :  { %3966 = vmatpush3.bf16.msra.mxu1 %v4127_v24 }
 0xd8d   :  { %3979 = vmatprep.subr.bf16.mxu1 %v4291_v9 }
 0xe47   :  { %v3009_v50 = vpop.f32.mrf.mxu1 }
 0xe48   :  { %v3016_v51 = vadd.f32 %v3009_v50, %v2863_v4 }
 0xe49   :  { %v3961_v53 = vpop.f32.mrf.mxu1 }
 0xe4a   :  { %4177 = vtanh.f32 %v3016_v51  ;;  %v3780_v59 = vmul.f32 -1.442695, %v3016_v51 }
 0xe4b   :  { %v3012_v54 = vpop.f32.mrf.mxu1 }
 0xe4c   :  { %v3017_v61 = vadd.f32 %v3012_v54, %v2864_v7 }
 0xe4d   :  { %v3962_v55 = vpop.f32.mrf.mxu1 }
 0xe4e   :  { %4179 = vtanh.f32 %v3017_v61  ;;  %v3781_v60 = vmul.f32 -1.442695, %v3017_v61 }
 0xe4f   :  { %4181 = vpow2.f32 %v3780_v59 }
 0xe50   :  { %4183 = vpow2.f32 %v3781_v60 }
 0xe57   :  { %v4178_v56 = vpop.eup %4177 }
 0xe58   :  { %3036 = vrot.lane.b32.xlu0 %v4178_v56, %s4301_s24 }
 0xe5b   :  { %v4180_v57 = vpop.eup %4179 }
 0xe5c   :  { %3038 = vrot.lane.b32.xlu1 %v4180_v57, %s4301_s24  ;;  %v4182_v62 = vpop.eup %4181 }
 0xe5d   :  { %v3024_v63 = vadd.f32 1.0, %v4182_v62  ;;  %v4184_v40 = vpop.eup %4183 }
 0xe5e   :  { %v3025_v12 = vadd.f32 1.0, %v4184_v40 }
 0xe5f   :  { %4185 = vrcp.f32 %v3024_v63 }
 0xe60   :  { %4187 = vrcp.f32 %v3025_v12 }
 0xe6c   :  { %v4186_v0 = vpop.eup %4185 }
 0xe6d   :  { %v4188_v2 = vpop.eup %4187  ;;  %v3032_v5 = vmul.f32 %v4186_v0, %v2954_v34  ;;  %v3978_v34 = vpop.f32.mrf.mxu0 }
 0xe6e   :  { %v3033_v10 = vmul.f32 %v4188_v2, %v2955_v37  ;;  %v3414_v34 = vld [vmem:[%s5367_s6 + $0x8] sm:$0xff] }
 0xeca   :  { %v3037_v39 = vpop.permute.xlu0 %3036 }
 0xecb   :  { %v3042_v1 = vmul.f32 %v4186_v0, %v3037_v39 }
 0xecd   :  { %3046 = vrot.lane.b32.xlu0 %v3042_v1, %s4301_s24 }
 0xece   :  { %v3039_v3 = vpop.permute.xlu1 %3038 }
 0xecf   :  { %v3043_v4 = vmul.f32 %v4188_v2, %v3039_v3 }
 0xed1   :  { %3048 = vrot.lane.b32.xlu1 %v3043_v4, %s4301_s24 }
 0xf3f   :  { %v3047_v6 = vpop.permute.xlu0 %3046 }
 0xf40   :  { %v5228_v7 = vadd.f32 %v3047_v6, %v3032_v5 }
 0xf42   :  { %4189 = vtanh.f32 %v5228_v7 }
 0xf43   :  { %v3049_v11 = vpop.permute.xlu1 %3048 }
 0xf44   :  { %v5231_v14 = vadd.f32 %v3049_v11, %v3033_v10 }
 0xf46   :  { %4191 = vtanh.f32 %v5231_v14 }
 0xf4f   :  { %v4190_v15 = vpop.eup %4189 }
 0xf50   :  { %3058 = vrot.lane.b32.xlu0 %v4190_v15, %s4301_s24 }
 0xf53   :  { %v4192_v17 = vpop.eup %4191 }
 0xf54   :  { %3090 = vrot.lane.b32.xlu0 %v2966_v45, %s4302_s2  ;;  %3060 = vrot.lane.b32.xlu1 %v4192_v17, %s4301_s24 }
 0xf58   :  { %3092 = vrot.lane.b32.xlu1 %v2967_v48, %s4302_s2 }
 0xfc2   :  { %v3059_v21 = vpop.permute.xlu0 %3058 }
 0xfc3   :  { %v3064_v23 = vmul.f32 %v4186_v0, %v3059_v21 }
 0xfc5   :  { %3068 = vrot.lane.b32.xlu0 %v3064_v23, %s4302_s2 }
 0xfc6   :  { %v3091_v25 = vpop.permute.xlu0 %3090  ;;  %v3061_v42 = vpop.permute.xlu1 %3060 }
 0xfc7   :  { %3096 = vst.msk [vmem:[#allocation4] sm:$0xff] %vm2558_vm14, %v3091_v25  ;;  %v3065_v27 = vmul.f32 %v4188_v2, %v3061_v42 }
 0xfc9   :  { %3070 = vrot.lane.b32.xlu1 %v3065_v27, %s4302_s2 }
 0xfca   :  { %v3093_v28 = vpop.permute.xlu1 %3092 }
 0xfcb   :  { %3097 = vst.msk [vmem:[#allocation4 + $0x8] sm:$0xff] %vm2558_vm14, %v3093_v28 }
 0xfce   :  { %v3101_v29 = vld [vmem:[#allocation4] sm:$0xff] }
 0xfd2   :  { %v3102_v46 = vld [vmem:[#allocation4 + $0x8] sm:$0xff] }
 0xfd3   :  { %v3105_v8 = vpack.c.bf16 %v3102_v46, %v3101_v29 }
 0xfd5   :  { %3967 = vmatprep.mubr.msk.bf16.mxu1 %vm2558_vm14, %v3105_v8 }
0x1037   :  { %v3069_v44 = vpop.permute.xlu0 %3068 }
0x1038   :  { %3075 = vst.msk [vmem:[#allocation7 + $0x10] sm:$0xff] %vm2558_vm14, %v3069_v44  ;;  %3098 = vst.msk [vmem:[#allocation4 + $0x10] sm:$0xff] %vm2558_vm14, %v3069_v44 }
0x103b   :  { %v3071_v16 = vpop.permute.xlu1 %3070 }
0x103c   :  { %3076 = vst.msk [vmem:[#allocation7 + $0x18] sm:$0xff] %vm2558_vm14, %v3071_v16  ;;  %3099 = vst.msk [vmem:[#allocation4 + $0x18] sm:$0xff] %vm2558_vm14, %v3071_v16 }
0x103f   :  { %v3103_v13 = vld [vmem:[#allocation4 + $0x10] sm:$0xff] }
0x1043   :  { %v3104_v52 = vld [vmem:[#allocation4 + $0x18] sm:$0xff] }
0x1044   :  { %v3106_v30 = vpack.c.bf16 %v3104_v52, %v3103_v13 }
0x1046   :  { %3968 = vmatmul.mubr.msk.bf16.vlgmr.msra.gmra.mxu1 %vm2558_vm14, %v3106_v30 }
0x1047   :  { %3980 = vmatpush3.bf16.msra.mxu1 %v4126_v18  ;;  %3983 = vmatprep.mubr.msk.bf16.mxu1 %vm4300_vm13, %v4291_v9 }
0x1048   :  { %3981 = vmatprep.subr.bf16.mxu1 %v4291_v9 }
0x104b   :  { %3982 = vmatpush3.bf16.msra.mxu1 %v4128_v20 }
0x104c   :  { %3998 = vmatprep.subr.mxu1 %v4291_v9 }
0x1106   :  { %v3969_v36 = vpop.f32.mrf.mxu1 }
0x1107   :  { %v3180_v37 = vadd.f32 %v3969_v36, %v3786_v35 }
0x1108   :  { %v3159_v22 = vpop.f32.mrf.mxu1 }
0x1109   :  { %v3178_v38 = vadd.f32 %v3786_v35, %v3159_v22 }
0x110a   :  { %v3970_v41 = vpop.f32.mrf.mxu1 }
0x110b   :  { %v3235_v43 = vadd.f32 %v3228_v32, %v3178_v38  ;;  %v3181_v45 = vadd.f32 %v3970_v41, %v3786_v35 }
0x110c   :  { %v3162_v48 = vpop.f32.mrf.mxu1 }
0x110d   :  { %4193 = vtanh.f32 %v3235_v43  ;;  %v3179_v49 = vadd.f32 %v3786_v35, %v3162_v48  ;;  %v3789_v53 = vmul.f32 -1.442695, %v3235_v43  ;;  %v3413_v35 = vld [vmem:[%s5367_s6] sm:$0xff] }
0x110f   :  { %v3236_v58 = vadd.f32 %v3231_v31, %v3179_v49  ;;  %v3415_v31 = vld [vmem:[%s5367_s6 + $0x10] sm:$0xff] }
0x1110   :  { %3990 = vmatpush3.msra.mxu0 %v3415_v31 }
0x1111   :  { %4195 = vtanh.f32 %v3236_v58  ;;  %v3790_v54 = vmul.f32 -1.442695, %v3236_v58  ;;  %3991 = vmatprep.subr.mxu0 %v4291_v9 }
0x1112   :  { %4197 = vpow2.f32 %v3789_v53  ;;  %3992 = vmatpush3.msra.mxu0 %v3414_v34  ;;  %v3510_v53 = vld [vmem:[%s5368_s7 + $0x10] sm:$0xff] }
0x1113   :  { %4199 = vpow2.f32 %v3790_v54  ;;  %3993 = vmatprep.subr.mxu0 %v4291_v9  ;;  %v3509_v54 = vld [vmem:[%s5368_s7 + $0x8] sm:$0xff] }
0x1114   :  { %3994 = vmatpush3.msra.mxu0 %v3413_v35 }
0x111a   :  { %v4194_v50 = vpop.eup %4193 }
0x111b   :  { %3255 = vrot.lane.b32.xlu0 %v4194_v50, %s4301_s24 }
0x111e   :  { %v4196_v51 = vpop.eup %4195 }
0x111f   :  { %3257 = vrot.lane.b32.xlu1 %v4196_v51, %s4301_s24  ;;  %v4198_v61 = vpop.eup %4197 }
0x1120   :  { %v3243_v55 = vadd.f32 1.0, %v4198_v61  ;;  %v4200_v56 = vpop.eup %4199  ;;  %v3508_v61 = vld [vmem:[%s5368_s7] sm:$0xff] }
0x1121   :  { %v3244_v57 = vadd.f32 1.0, %v4200_v56 }
0x1122   :  { %4201 = vrcp.f32 %v3243_v55 }
0x1123   :  { %4203 = vrcp.f32 %v3244_v57 }
0x112f   :  { %v4202_v59 = vpop.eup %4201 }
0x1130   :  { %v4204_v63 = vpop.eup %4203  ;;  %v3251_v0 = vmul.f32 0.0, %v4202_v59 }
0x1131   :  { %v3252_v2 = vmul.f32 0.0, %v4204_v63 }
0x118d   :  { %v3256_v60 = vpop.permute.xlu0 %3255 }
0x118e   :  { %v3261_v62 = vmul.f32 %v4202_v59, %v3256_v60  ;;  %v3794_v60 = vld [vmem:[%s5367_s6 + $0x20] ss:$0 sm:$0xff] }
0x1190   :  { %3265 = vrot.lane.b32.xlu0 %v3261_v62, %s4301_s24 }
0x1191   :  { %v3258_v40 = vpop.permute.xlu1 %3257 }
0x1192   :  { %v3262_v12 = vmul.f32 %v4204_v63, %v3258_v40  ;;  %v3797_v40 = vld [vmem:[%s5367_s6 + $0x22] ss:$0 sm:$0xff] }
0x1194   :  { %3267 = vrot.lane.b32.xlu1 %v3262_v12, %s4301_s24 }
0x1202   :  { %v3266_v39 = vpop.permute.xlu0 %3265 }
0x1203   :  { %v5277_v1 = vadd.f32 %v3266_v39, %v3251_v0 }
0x1205   :  { %4205 = vtanh.f32 %v5277_v1 }
0x1206   :  { %v3268_v3 = vpop.permute.xlu1 %3267 }
0x1207   :  { %v3272_v4 = vadd.f32 %v3268_v3, %v3252_v2 }
0x1209   :  { %4207 = vtanh.f32 %v3272_v4 }
0x1212   :  { %v4206_v5 = vpop.eup %4205 }
0x1213   :  { %3277 = vrot.lane.b32.xlu0 %v4206_v5, %s4301_s24 }
0x1216   :  { %v4208_v6 = vpop.eup %4207 }
0x1217   :  { %3279 = vrot.lane.b32.xlu1 %v4208_v6, %s4301_s24 }
0x1285   :  { %v3278_v10 = vpop.permute.xlu0 %3277 }
0x1286   :  { %v3283_v15 = vmul.f32 %v4202_v59, %v3278_v10 }
0x1289   :  { %v3280_v11 = vpop.permute.xlu1 %3279 }
0x128a   :  { %v3284_v17 = vmul.f32 %v4204_v63, %v3280_v11 }
0x128c   :  { %v3285_v19 = vpack.c.bf16 %v3284_v17, %v3283_v15 }
0x128e   :  { %3287 = vrot.lane.b32.xlu0 %v3285_v19, %s4302_s2 }
0x1300   :  { %v3288_v18 = vpop.permute.xlu0 %3287 }
0x1301   :  { %3984 = vmatmul.mubr.msk.bf16.vlgmr.msra.gmra.mxu1 %vm2558_vm14, %v3288_v18 }
0x1302   :  { %4004 = vmatprep.mubr.msk.f32.mxu1 %vm4300_vm13, %v4291_v9  ;;  %3999 = vmatpush3.msra.mxu1 %v3510_v53 }
0x1303   :  { %4000 = vmatprep.subr.mxu1 %v4291_v9 }
0x1304   :  { %4001 = vmatpush3.msra.mxu1 %v3509_v54 }
0x1305   :  { %4002 = vmatprep.subr.mxu1 %v4291_v9  ;;  %v3796_v9 = vld [vmem:[%s5367_s6 + $0x21] ss:$0 sm:$0xff]  ;;  %s4304_s6 = smov [#allocation7]  }
0x1306   :  { %4003 = vmatpush3.msra.mxu1 %v3508_v61 }
0x13c1   :  { %v3326_v24 = vpop.f32.mrf.mxu1 }
0x13c2   :  { %v3333_v20 = vadd.f32 %v3326_v24, %v3180_v37 }
0x13c3   :  { %v3985_v21 = vpop.f32.mrf.mxu1 }
0x13c4   :  { %v3792_v41 = vmul.f32 -1.442695, %v3333_v20 }
0x13c5   :  { %v3329_v23 = vpop.f32.mrf.mxu1 }
0x13c6   :  { %v3334_v25 = vadd.f32 %v3329_v23, %v3181_v45 }
0x13c7   :  { %v3986_v42 = vpop.f32.mrf.mxu1 }
0x13c8   :  { %4209 = vtanh.f32 %v3334_v25  ;;  %v3793_v28 = vmul.f32 -1.442695, %v3334_v25 }
0x13ca   :  { %4211 = vpow2.f32 %v3793_v28 }
0x13d5   :  { %v4210_v27 = vpop.eup %4209 }
0x13d6   :  { %3355 = vrot.lane.b32.xlu1 %v4210_v27, %s4301_s24 }
0x13d7   :  { %v4212_v29 = vpop.eup %4211 }
0x13d8   :  { %v3342_v46 = vadd.f32 1.0, %v4212_v29 }
0x13da   :  { %4213 = vrcp.f32 %v3342_v46 }
0x13e7   :  { %v4214_v8 = vpop.eup %4213 }
0x13e8   :  { %v3350_v13 = vmul.f32 %v4214_v8, %v3272_v4 }
0x1448   :  { %v3356_v44 = vpop.permute.xlu1 %3355 }
0x1449   :  { %v3360_v16 = vmul.f32 %v4214_v8, %v3356_v44 }
0x144b   :  { %3365 = vrot.lane.b32.xlu0 %v3360_v16, %s4301_s24 }
0x14bd   :  { %v3366_v52 = vpop.permute.xlu0 %3365 }
0x14be   :  { %v5288_v30 = vadd.f32 %v3366_v52, %v3350_v13 }
0x14c0   :  { %4215 = vtanh.f32 %v5288_v30 }
0x14c1   :  { %4217 = vtanh.f32 %v3333_v20 }
0x14c2   :  { %4219 = vpow2.f32 %v3792_v41 }
0x14cd   :  { %v4216_v32 = vpop.eup %4215 }
0x14ce   :  { %3377 = vrot.lane.b32.xlu1 %v4216_v32, %s4301_s24  ;;  %v4218_v38 = vpop.eup %4217 }
0x14cf   :  { %v4220_v43 = vpop.eup %4219 }
0x14d0   :  { %v3341_v45 = vadd.f32 1.0, %v4220_v43 }
0x14d2   :  { %3406 = vrot.lane.b32.xlu1 %v3284_v17, %s4302_s2  ;;  %4221 = vrcp.f32 %v3341_v45 }
0x14df   :  { %v4222_v49 = vpop.eup %4221 }
0x14e0   :  { %v3349_v55 = vmul.f32 %v4222_v49, %v5277_v1 }
0x1540   :  { %v3378_v36 = vpop.permute.xlu1 %3377 }
0x1541   :  { %v3382_v37 = vmul.f32 %v4214_v8, %v3378_v36 }
0x1543   :  { %3387 = vrot.lane.b32.xlu0 %v3382_v37, %s4302_s2 }
0x1544   :  { %v3407_v22 = vpop.permute.xlu1 %3406 }
0x1545   :  { %3410 = vst.msk [vmem:[#allocation4 - $0x7] sm:$0x80] %vm3409_vm15, %v3407_v22 }
0x1547   :  { %3353 = vrot.lane.b32.xlu0 %v4218_v38, %s4301_s24 }
0x15b5   :  { %v3388_v48 = vpop.permute.xlu0 %3387 }
0x15b6   :  { %3393 = vst.msk [vmem:[#allocation7 + $0x28] sm:$0xff] %vm2558_vm14, %v3388_v48 }
0x15b7   :  { %3411 = vst.msk [vmem:[#allocation4 - $0x6] sm:$0x80] %vm3409_vm15, %v3388_v48 }
0x15b9   :  { %v3354_v58 = vpop.permute.xlu0 %3353 }
0x15ba   :  { %v3359_v50 = vmul.f32 %v4222_v49, %v3354_v58 }
0x15bc   :  { %3363 = vrot.lane.b32.xlu1 %v3359_v50, %s4301_s24 }
0x15be   :  { %v3412_v51 = vld [vmem:[#allocation4] sm:$0x3] }
0x15bf   :  { %3996 = vmatmul.mubr.msk.f32.vlgmr.msra.gmra.mxu0 %vm2558_vm14, %v3412_v51 }
0x162e   :  { %v3364_v56 = vpop.permute.xlu1 %3363 }
0x162f   :  { %v3369_v57 = vadd.f32 %v3364_v56, %v3349_v55 }
0x1631   :  { %4223 = vtanh.f32 %v3369_v57 }
0x163e   :  { %v4224_v59 = vpop.eup %4223 }
0x163f   :  { %3375 = vrot.lane.b32.xlu0 %v4224_v59, %s4301_s24  ;;  %s3606_s24 = sshll.u32 %s4304_s6, 4  ;;  %s3607_s24 = int_to_ptr.vmem [resolvable:$true] %s3606_s24 }
0x1640   :  { %p4232_p1 = scmp.lt.s32.totalorder %s3607_s24, %s3607_s24 }
0x1643   :  { %2763 = vrot.lane.b32.xlu0 %v5172_v26, %s4303_s26 }
0x1647   :  { %3079 = vrot.lane.b32.xlu0 %v5228_v7, %s4303_s26 }
0x164b   :  { %3396 = vrot.lane.b32.xlu0 %v3369_v57, %s4303_s26 }
0x167f   :  { %v3493_v62 = vpop.f32.mrf.mxu0 }
0x1680   :  { %v3494_v63 = vadd.f32 %v3794_v60, %v3493_v62 }
0x1681   :  { %v3997_v12 = vpop.f32.mrf.mxu0 }
0x1682   :  { %v3501_v0 = vmul.f32 %v3796_v9, %v3494_v63 }
0x1684   :  { %v3506_v26 = vadd.f32 %v3797_v40, %v3501_v0 }
0x1686   :  { %v3507_v39 = vmax.f32 %v3506_v26, 0.0 }
0x1688   :  { %4005 = vmatmul.mubr.msk.f32.vlgmr.msra.gmra.mxu1 %vm526_vm7, %v3507_v39 }
0x16b1   :  { %v3376_v7 = vpop.permute.xlu0 %3375 }
0x16b2   :  { %v3381_v1 = vmul.f32 %v4222_v49, %v3376_v7 }
0x16b4   :  { %3385 = vrot.lane.b32.xlu1 %v3381_v1, %s4302_s2  ;;  %s4227_s2 = scalar_lea.vmem %s3607_s24, 768 }
0x16b5   :  { %v2764_v2 = vpop.permute.xlu0 %2763  ;;  %p4228_p0 = scmp.ne.s32.totalorder %s3607_s24, %s4227_s2  ;;  %p4233_p2 = scmp.lt.s32.totalorder %s4227_s2, %s4227_s2 }
0x16b6   :  { %2769 = vst.msk [vmem:[#allocation9] sm:$0xff] %vm2558_vm14, %v2764_v2 }
0x16b7   :  { %p4234_p3 = por %p4233_p2, %p4232_p1 }
0x16b8   :  { %2765 = vrot.lane.b32.xlu1 %v5175_v47, %s4303_s26 }
0x16b9   :  { %v3080_v3 = vpop.permute.xlu0 %3079  ;;  %p4235_p4 = pnand %p4234_p3, %p4228_p0 }
0x16ba   :  { %3086 = vst.msk [vmem:[#allocation9 + $0x10] sm:$0xff] %vm2558_vm14, %v3080_v3 }
0x16bc   :  { %3081 = vrot.lane.b32.xlu1 %v5231_v14, %s4303_s26 }
0x16bd   :  { %v3397_v4 = vpop.permute.xlu0 %3396 }
0x16be   :  { %3403 = vst.msk [vmem:[#allocation9 + $0x20] sm:$0xff] %vm2558_vm14, %v3397_v4 }
0x16c0   :  { %3398 = vrot.lane.b32.xlu1 %v5288_v30, %s4303_s26 }
0x1726   :  { %v3386_v5 = vpop.permute.xlu1 %3385 }
0x1727   :  { %3392 = vst.msk [vmem:[#allocation7 + $0x20] sm:$0xff] %vm2558_vm14, %v3386_v5 }
0x1728   :  { %4238 = shalt.err (!%p4235_p4)
}
0x1729   :  { %s4305_s1 = smov 128   ;;  %s4306_s4 = smov 8  }
0x172a   :  { %3612 = dma.vmem_to_hbm [thread:$0]  %s3607_s24, 768, %s5370_s9, [#allocation8], %s4305_s1, %s4305_s1, %s4306_s4   ;;  %v2766_v47 = vpop.permute.xlu1 %2765 }
0x172b   :  { %2770 = vst.msk [vmem:[#allocation9 + $0x8] sm:$0xff] %vm2558_vm14, %v2766_v47  ;;  %s4307_s12 = smov [#allocation9]  }
0x172c   :  { %s3618_s3 = sshll.u32 %s4307_s12, 4  ;;  %s3619_s3 = int_to_ptr.vmem [resolvable:$true] %s3618_s3 }
0x172d   :  { %s4247_s23 = scalar_lea.vmem %s3619_s3, 768  ;;  %p4252_p6 = scmp.lt.s32.totalorder %s3619_s3, %s3619_s3 }
0x172e   :  { %v3082_v14 = vpop.permute.xlu1 %3081  ;;  %p4248_p5 = scmp.ne.s32.totalorder %s3619_s3, %s4247_s23  ;;  %p4253_p7 = scmp.lt.s32.totalorder %s4247_s23, %s4247_s23 }
0x172f   :  { %3087 = vst.msk [vmem:[#allocation9 + $0x18] sm:$0xff] %vm2558_vm14, %v3082_v14 }
0x1730   :  { %p4254_p8 = por %p4253_p7, %p4252_p6 }
0x1732   :  { %v3399_v6 = vpop.permute.xlu1 %3398  ;;  %p4255_p9 = pnand %p4254_p8, %p4248_p5 }
0x1733   :  { %3404 = vst.msk [vmem:[#allocation9 + $0x28] sm:$0xff] %vm2558_vm14, %v3399_v6 }
0x1734   :  { %4258 = shalt.err (!%p4255_p9)
}
0x1735   :  { %3624 = dma.vmem_to_hbm [thread:$0]  %s3619_s3, 768, %s5371_s10, [#allocation8], %s4305_s1, %s4305_s1, %s4306_s4   ;;  %vm3589_vm0 = vcmask 33792  }
0x1736   :  { %v3798_v10 = vld [vmem:[%s5368_s7 + $0x18] ss:$0 sm:$0xff]  ;;  %s4308_s16 = smov [#allocation5]  }
0x1737   :  { %s3597_s17 = sshll.u32 %s4308_s16, 4  ;;  %s3598_s17 = int_to_ptr.vmem [resolvable:$true] %s3597_s17 }
0x1738   :  { %s4267_s18 = scalar_lea.vmem %s3598_s17, 32  ;;  %p4272_p11 = scmp.lt.s32.totalorder %s3598_s17, %s3598_s17 }
0x1739   :  { %p4268_p10 = scmp.ne.s32.totalorder %s3598_s17, %s4267_s18  ;;  %p4273_p12 = scmp.lt.s32.totalorder %s4267_s18, %s4267_s18 }
0x173b   :  { %p4274_p13 = por %p4273_p12, %p4272_p11 }
0x173d   :  { %p4275_p0 = pnand %p4274_p13, %p4268_p10 }
0x1748   :  { %v3585_v11 = vpop.f32.mrf.mxu1 }
0x1749   :  { %v3586_v15 = vadd.f32 %v3798_v10, %v3585_v11 }
0x174a   :  { %v4006_v17 = vpop.f32.mrf.mxu1 }
0x174b   :  { %3590 = vst.msk [vmem:[#allocation5] sm:$0x3] %vm3589_vm0, %v3586_v15 }
0x174c   :  { %4278 = shalt.err (!%p4275_p0)
}
0x174d   :  { %3600 = dma.vmem_to_hbm [thread:$0]  %s3598_s17, 32, %s5369_s8, [#allocation6]  }
0x174e   :  { %4287 = dma.done.wait [#allocation6], 32  }
0x174f   :  { %4288 = vsyncadd [#allocation6], 4294967264 }
0x1750   :  { %4289 = dma.done.wait [#allocation8], 1536  }
0x1751   :  { %4290 = vsyncadd [#allocation8], 4294965760 }
0x1752   :  { %3634 = vsyncpa [#allocation6], 1 }
0x1753   :  { %3635 = vsyncpa [#allocation8], 1 }

</bundles_post_ra>
